<compile_context>
chip_gen: v7x
topology: tpu7x:2x2x1
jax: 0.10.0
libtpu: 0.0.40
codegen_flags: <defaults>
</compile_context>

<pallas_src>
import functools
import math

import jax
import jax.numpy as jnp
from jax import lax
from jax.experimental import pallas as pl
from jax.experimental.pallas import tpu as pltpu


def _round_up(x, m):
    return (x + m - 1) // m * m


def _pick_vmem_limit():
    # v5e/v6e: 128 MiB VMEM/core -> ~96-100 MiB budget; v7x: 64 MiB -> ~48 MiB budget.
    try:
        cap = pltpu.get_tpu_info().vmem_capacity_bytes
        return int(min(cap * 3 // 4, 100 * 1024 * 1024))
    except Exception:
        return 48 * 1024 * 1024


# ----------------------------------------------------------------------------
# Pass 1: fused conv (KH*KW shifted-slab matmuls, f32 accumulation) + per-tile
#         channel sum / sum-of-squares partials.  Conv intermediate stored bf16.
# ----------------------------------------------------------------------------
def _fused_conv_stats_kernel(xs_ref, w_ref, y_ref, stats_ref, acc_ref, *,
                             kh, kw, ow8, stride, dilation):
    acc_ref[...] = jnp.zeros_like(acc_ref)
    for i in range(kh):
        for j in range(kw):
            if stride == 1:
                sl = slice(j * dilation, j * dilation + ow8)
            else:
                sl = pl.ds(j * dilation, ow8, stride=stride)
            lhs = xs_ref[i, :, sl, :]                    # (tile_oh, ow8, cin_pad) bf16
            lhs = lhs.reshape(-1, lhs.shape[-1])         # (tile_m, cin_pad); layout-preserving (ow8 % 16 == 0)
            acc_ref[...] += jnp.dot(lhs, w_ref[i * kw + j],
                                    preferred_element_type=jnp.float32)
    acc = acc_ref[...]
    y_ref[0] = acc.astype(y_ref.dtype)                   # bf16 intermediate (half HBM traffic)
    s = jnp.sum(acc, axis=0, keepdims=True)              # (1, c_pad)
    sq = jnp.sum(acc * acc, axis=0, keepdims=True)       # (1, c_pad)
    stats_ref[0, 0] = jnp.concatenate([s, sq], axis=0)   # rows: [sum, sumsq]


# ----------------------------------------------------------------------------
# Pass 2: folded BatchNorm affine + ReLU, with the channels-first transpose
#         folded into the store (XLU slot is idle in this memory-bound pass).
# ----------------------------------------------------------------------------
def _bn_relu_transpose_kernel(y_ref, scale_ref, shift_ref, o_ref):
    y = y_ref[0].astype(jnp.float32)                              # (tile_m, c_pad)
    z = jnp.maximum(y * scale_ref[...] + shift_ref[...], 0.0)
    o_ref[0] = z.T                                                # (c_pad, tile_m)


# ----------------------------------------------------------------------------
# ConvModule.forward: conv (bias=False) -> BN (training batch stats) -> ReLU
# ----------------------------------------------------------------------------
def conv_module_forward(x, weight, gamma, beta, *, stride=1, padding=0,
                        dilation=1, eps=1e-5, tile_m_target=512):
    n, cin, h, w = x.shape
    cout, cin_w, kh, kw = weight.shape
    assert cin == cin_w, "groups != 1 not supported"   # TODO(synk): grouped conv

    oh = (h + 2 * padding - dilation * (kh - 1) - 1) // stride + 1
    ow = (w + 2 * padding - dilation * (kw - 1) - 1) // stride + 1

    cin_pad = _round_up(cin, 128)
    c_pad = _round_up(cout, 128)   # TODO(synk): 256-align when compute-bound on v6e/v7x MXU
    ow8 = _round_up(ow, 16)        # 16 = bf16 sublane tile -> layout-preserving reshapes

    # tile_oh granularity so tile_m = tile_oh * ow8 is a multiple of 128 (lane-dense,
    # unmasked stores for both the flat and the transposed output tiles), while keeping
    # the padded-row waste bounded by one tile_oh granule.
    unit = 128 // math.gcd(ow8, 128)
    t_guess = max(1, -(-(oh * ow8) // tile_m_target))
    tile_oh = _round_up(-(-oh // t_guess), unit)
    oh_pad = _round_up(oh, tile_oh)
    num_t = oh_pad // tile_oh
    tile_m = tile_oh * ow8
    m_pad = oh_pad * ow8

    # -------- XLA prep: zero-padded NHWC input, expanded only along KH (KHx, not KH*KWx).
    hp_pad = max((oh_pad - 1) * stride + (kh - 1) * dilation + 1, h + 2 * padding)
    wp_pad = _round_up(max((ow8 - 1) * stride + (kw - 1) * dilation + 1,
                           w + 2 * padding), 8)
    x_nhwc = jnp.transpose(x, (0, 2, 3, 1)).astype(jnp.bfloat16)
    xpad = jnp.zeros((n, hp_pad, wp_pad, cin_pad), jnp.bfloat16)
    xpad = xpad.at[:, padding:padding + h, padding:padding + w, :cin].set(x_nhwc)
    # One shifted slab per kernel row; padded rows/cols/channels are zeros, so padded
    # output positions are exactly zero and never perturb the BatchNorm statistics.
    slabs = [xpad[:, i * dilation: i * dilation + (oh_pad - 1) * stride + 1: stride, :, :]
             for i in range(kh)]
    xs = jnp.stack(slabs, axis=1).reshape(n * kh, oh_pad, wp_pad, cin_pad)

    # Per-tap weight matrices: (KH*KW, Cin_pad, Cout_pad), bf16 MXU operands.
    w_taps = jnp.transpose(weight, (2, 3, 1, 0)).reshape(kh * kw, cin, cout)
    w_p = jnp.zeros((kh * kw, cin_pad, c_pad), jnp.bfloat16)
    w_p = w_p.at[:, :cin, :cout].set(w_taps.astype(jnp.bfloat16))

    gamma_p = jnp.zeros((c_pad,), jnp.float32).at[:cout].set(gamma.astype(jnp.float32))
    beta_p = jnp.zeros((c_pad,), jnp.float32).at[:cout].set(beta.astype(jnp.float32))

    cparams = pltpu.CompilerParams(
        dimension_semantics=("parallel", "parallel"),
        vmem_limit_bytes=_pick_vmem_limit(),
    )

    # ---------------- Pass 1: fused conv + per-tile channel partial sums ------------
    kernel1 = functools.partial(_fused_conv_stats_kernel, kh=kh, kw=kw, ow8=ow8,
                                stride=stride, dilation=dilation)
    cost1 = pl.CostEstimate(
        flops=2 * n * m_pad * kh * kw * cin_pad * c_pad,
        transcendentals=0,
        bytes_accessed=(xs.size * 2 + w_p.size * 2
                        + n * m_pad * c_pad * 2 + n * num_t * 2 * c_pad * 4),
    )
    y_conv, stats = pl.pallas_call(
        kernel1,
        out_shape=(jax.ShapeDtypeStruct((n, m_pad, c_pad), jnp.bfloat16),
                   jax.ShapeDtypeStruct((n, num_t, 2, c_pad), jnp.float32)),
        grid=(n, num_t),
        in_specs=[
            pl.BlockSpec((kh, tile_oh, wp_pad, cin_pad), lambda b, t: (b, t, 0, 0)),
            # Grid-invariant weights (default double-buffered; see TODO above).
            pl.BlockSpec((kh * kw, cin_pad, c_pad), lambda b, t: (0, 0, 0)),
        ],
        out_specs=(pl.BlockSpec((1, tile_m, c_pad), lambda b, t: (b, t, 0)),
                   pl.BlockSpec((1, 1, 2, c_pad), lambda b, t: (b, t, 0, 0))),
        scratch_shapes=[pltpu.VMEM((tile_m, c_pad), jnp.float32)],
        compiler_params=cparams,
        cost_estimate=cost1,
    )(xs, w_p)

    # ---------------- Tiny BN fold in XLA (O(Cout)) ----------------------------------
    m_true = n * oh * ow                              # padded positions are exact zeros
    stats_tot = jnp.sum(stats, axis=(0, 1))           # (2, c_pad)
    mean = stats_tot[0] / m_true
    # NOTE: E[x^2]-E[x]^2 in f32 can lose precision for large-mean channels; acceptable
    # at bf16-conv tolerance.  Use a Welford per-tile merge if tight parity is required.
    var = jnp.maximum(stats_tot[1] / m_true - mean * mean, 0.0)
    inv_std = lax.rsqrt(var + eps)
    scale = (gamma_p * inv_std).reshape(1, c_pad)
    shift = (beta_p - mean * gamma_p * inv_std).reshape(1, c_pad)

    # ---------------- Pass 2: y*scale + shift, ReLU, transposed store ----------------
    cost2 = pl.CostEstimate(
        flops=3 * n * m_pad * c_pad,
        transcendentals=0,
        bytes_accessed=n * m_pad * c_pad * (2 + 4) + 2 * c_pad * 4,
    )
    out_t = pl.pallas_call(
        _bn_relu_transpose_kernel,
        out_shape=jax.ShapeDtypeStruct((n, c_pad, m_pad), jnp.float32),
        grid=(n, num_t),
        in_specs=[pl.BlockSpec((1, tile_m, c_pad), lambda b, t: (b, t, 0)),
                  pl.BlockSpec((1, c_pad), lambda b, t: (0, 0)),
                  pl.BlockSpec((1, c_pad), lambda b, t: (0, 0))],
        out_specs=pl.BlockSpec((1, c_pad, tile_m), lambda b, t: (b, 0, t)),
        compiler_params=cparams,
        cost_estimate=cost2,
    )(y_conv, scale, shift)

    # NCHW comes straight out of pass 2: only a metadata reshape + padding slice remain.
    out = out_t.reshape(n, c_pad, oh_pad, ow8)[:, :cout, :oh, :ow]
    return out


# ----------------------------------------------------------------------------
# Pure-JAX reference for validation
# ----------------------------------------------------------------------------
def _reference(x, weight, gamma, beta, *, stride, padding, dilation, eps):
    y = jax.lax.conv_general_dilated(
        x, weight,
        window_strides=(stride, stride),
        padding=[(padding, padding), (padding, padding)],
        rhs_dilation=(dilation, dilation),
        dimension_numbers=("NCHW", "OIHW", "NCHW"),
    )
    mean = jnp.mean(y, axis=(0, 2, 3), keepdims=True)
    var = jnp.mean((y - mean) ** 2, axis=(0, 2, 3), keepdims=True)
    y = (y - mean) * jax.lax.rsqrt(var + eps)
    y = y * gamma.reshape(1, -1, 1, 1) + beta.reshape(1, -1, 1, 1)
    return jnp.maximum(y, 0.0)


if __name__ == "__main__":
    # ConvModule(in_channels=4, out_channels=8, kernel_size=3, stride=1, padding=1)
    N, CIN, H, W = 2, 4, 16, 16
    COUT, KH, KW = 8, 3, 3
    STRIDE, PADDING, DILATION, EPS = 1, 1, 1, 1e-5

    key = jax.random.PRNGKey(0)
    kx, kw_, kg, kb = jax.random.split(key, 4)
    x = jax.random.normal(kx, (N, CIN, H, W), dtype=jnp.float32)
    weight = jax.random.normal(kw_, (COUT, CIN, KH, KW), dtype=jnp.float32) * 0.1
    gamma = 1.0 + 0.1 * jax.random.normal(kg, (COUT,), dtype=jnp.float32)
    beta = 0.1 * jax.random.normal(kb, (COUT,), dtype=jnp.float32)

    # tile_m_target=128 at this small shape -> 2 output-row tiles per image (grid (2, 2)),
    # exercising the tiled pipeline and the cross-tile BN reduction path.
    out = conv_module_forward(x, weight, gamma, beta,
                              stride=STRIDE, padding=PADDING,
                              dilation=DILATION, eps=EPS, tile_m_target=128)
    out = jax.block_until_ready(out)

    ref = _reference(x, weight, gamma, beta,
                     stride=STRIDE, padding=PADDING, dilation=DILATION, eps=EPS)
    assert out.shape == (N, COUT, H, W)
    # bf16 MXU inputs + bf16 conv intermediate (f32 accumulate / f32 stats) -> loose tol.
    assert jnp.allclose(out, ref, rtol=2e-2, atol=2e-2), "mismatch vs reference"

    print("KERNEL_OK")
</pallas_src>

<mosaic_0001>
module attributes {stable_mosaic.version = 11 : i64} {
  func.func @_fused_conv_stats_kernel(%arg0: i32, %arg1: i32, %arg2: memref<3x8x24x128xbf16, #tpu.memory_space<vmem>>, %arg3: memref<9x128x128xbf16, #tpu.memory_space<vmem>>, %arg4: memref<1x128x128xbf16, #tpu.memory_space<vmem>>, %arg5: memref<1x1x2x128xf32, #tpu.memory_space<vmem>>, %arg6: memref<128x128xf32, #tpu.memory_space<vmem>>) attributes {dimension_semantics = [#tpu.dimension_semantics<parallel>, #tpu.dimension_semantics<parallel>], iteration_bounds = array<i64: 2, 2>, scalar_prefetch = 0 : i64, scratch_operands = 1 : i64, tpu.core_type = #tpu.core_type<tc>, window_params = [{transform_indices = @transform_0, window_bounds = array<i64: 3, 8, 24, 128>}, {pipeline_mode = #tpu.pipeline_mode<synchronous>, transform_indices = @transform_1, window_bounds = array<i64: 9, 128, 128>}, {transform_indices = @transform_2, window_bounds = array<i64: 1, 128, 128>}, {transform_indices = @transform_3, window_bounds = array<i64: 1, 1, 2, 128>}]} {
    %cst = arith.constant 0.000000e+00 : f32
    %0 = vector.broadcast %cst : f32 to vector<128x128xf32>
    %c0 = arith.constant 0 : index
    %c0_0 = arith.constant 0 : index
    %1 = vector.load %arg6[%c0, %c0_0] : memref<128x128xf32, #tpu.memory_space<vmem>>, vector<128x128xf32>
    tpu.vector_store %arg6[%c0, %c0_0], %0 {strides = array<i32>} : memref<128x128xf32, #tpu.memory_space<vmem>>, vector<128x128xf32>,
    %c0_1 = arith.constant 0 : index
    %c0_2 = arith.constant 0 : index
    %c0_3 = arith.constant 0 : index
    %c0_4 = arith.constant 0 : index
    %2 = vector.load %arg2[%c0_1, %c0_2, %c0_3, %c0_4] : memref<3x8x24x128xbf16, #tpu.memory_space<vmem>>, vector<1x8x16x128xbf16>
    %3 = vector.shape_cast %2 : vector<1x8x16x128xbf16> to vector<8x16x128xbf16>
    %4 = vector.shape_cast %3 : vector<8x16x128xbf16> to vector<128x128xbf16>
    %c0_5 = arith.constant 0 : index
    %c0_6 = arith.constant 0 : index
    %5 = vector.load %arg6[%c0_5, %c0_6] : memref<128x128xf32, #tpu.memory_space<vmem>>, vector<128x128xf32>
    %c0_7 = arith.constant 0 : index
    %c0_8 = arith.constant 0 : index
    %c0_9 = arith.constant 0 : index
    %6 = vector.load %arg3[%c0_7, %c0_8, %c0_9] : memref<9x128x128xbf16, #tpu.memory_space<vmem>>, vector<1x128x128xbf16>
    %7 = vector.shape_cast %6 : vector<1x128x128xbf16> to vector<128x128xbf16>
    %cst_10 = arith.constant dense<0.000000e+00> : vector<128x128xf32>
    %8 = tpu.matmul %4, %7, %cst_10 {dimension_numbers = #tpu.dot_dimension_numbers<[1], [0], [0], [1], [0, 0, 1, 1], [], []>} : vector<128x128xbf16>, vector<128x128xbf16>, vector<128x128xf32> -> vector<128x128xf32>
    %9 = arith.addf %5, %8 : vector<128x128xf32>
    %c0_11 = arith.constant 0 : index
    %c0_12 = arith.constant 0 : index
    %10 = vector.load %arg6[%c0_11, %c0_12] : memref<128x128xf32, #tpu.memory_space<vmem>>, vector<128x128xf32>
    tpu.vector_store %arg6[%c0_11, %c0_12], %9 {strides = array<i32>} : memref<128x128xf32, #tpu.memory_space<vmem>>, vector<128x128xf32>,
    %c0_13 = arith.constant 0 : index
    %c0_14 = arith.constant 0 : index
    %c1 = arith.constant 1 : index
    %c0_15 = arith.constant 0 : index
    %11 = vector.load %arg2[%c0_13, %c0_14, %c1, %c0_15] : memref<3x8x24x128xbf16, #tpu.memory_space<vmem>>, vector<1x8x16x128xbf16>
    %12 = vector.shape_cast %11 : vector<1x8x16x128xbf16> to vector<8x16x128xbf16>
    %13 = vector.shape_cast %12 : vector<8x16x128xbf16> to vector<128x128xbf16>
    %c0_16 = arith.constant 0 : index
    %c0_17 = arith.constant 0 : index
    %14 = vector.load %arg6[%c0_16, %c0_17] : memref<128x128xf32, #tpu.memory_space<vmem>>, vector<128x128xf32>
    %c1_18 = arith.constant 1 : index
    %c0_19 = arith.constant 0 : index
    %c0_20 = arith.constant 0 : index
    %15 = vector.load %arg3[%c1_18, %c0_19, %c0_20] : memref<9x128x128xbf16, #tpu.memory_space<vmem>>, vector<1x128x128xbf16>
    %16 = vector.shape_cast %15 : vector<1x128x128xbf16> to vector<128x128xbf16>
    %cst_21 = arith.constant dense<0.000000e+00> : vector<128x128xf32>
    %17 = tpu.matmul %13, %16, %cst_21 {dimension_numbers = #tpu.dot_dimension_numbers<[1], [0], [0], [1], [0, 0, 1, 1], [], []>} : vector<128x128xbf16>, vector<128x128xbf16>, vector<128x128xf32> -> vector<128x128xf32>
    %18 = arith.addf %14, %17 : vector<128x128xf32>
    %c0_22 = arith.constant 0 : index
    %c0_23 = arith.constant 0 : index
    %19 = vector.load %arg6[%c0_22, %c0_23] : memref<128x128xf32, #tpu.memory_space<vmem>>, vector<128x128xf32>
    tpu.vector_store %arg6[%c0_22, %c0_23], %18 {strides = array<i32>} : memref<128x128xf32, #tpu.memory_space<vmem>>, vector<128x128xf32>,
    %c0_24 = arith.constant 0 : index
    %c0_25 = arith.constant 0 : index
    %c2 = arith.constant 2 : index
    %c0_26 = arith.constant 0 : index
    %20 = vector.load %arg2[%c0_24, %c0_25, %c2, %c0_26] : memref<3x8x24x128xbf16, #tpu.memory_space<vmem>>, vector<1x8x16x128xbf16>
    %21 = vector.shape_cast %20 : vector<1x8x16x128xbf16> to vector<8x16x128xbf16>
    %22 = vector.shape_cast %21 : vector<8x16x128xbf16> to vector<128x128xbf16>
    %c0_27 = arith.constant 0 : index
    %c0_28 = arith.constant 0 : index
    %23 = vector.load %arg6[%c0_27, %c0_28] : memref<128x128xf32, #tpu.memory_space<vmem>>, vector<128x128xf32>
    %c2_29 = arith.constant 2 : index
    %c0_30 = arith.constant 0 : index
    %c0_31 = arith.constant 0 : index
    %24 = vector.load %arg3[%c2_29, %c0_30, %c0_31] : memref<9x128x128xbf16, #tpu.memory_space<vmem>>, vector<1x128x128xbf16>
    %25 = vector.shape_cast %24 : vector<1x128x128xbf16> to vector<128x128xbf16>
    %cst_32 = arith.constant dense<0.000000e+00> : vector<128x128xf32>
    %26 = tpu.matmul %22, %25, %cst_32 {dimension_numbers = #tpu.dot_dimension_numbers<[1], [0], [0], [1], [0, 0, 1, 1], [], []>} : vector<128x128xbf16>, vector<128x128xbf16>, vector<128x128xf32> -> vector<128x128xf32>
    %27 = arith.addf %23, %26 : vector<128x128xf32>
    %c0_33 = arith.constant 0 : index
    %c0_34 = arith.constant 0 : index
    %28 = vector.load %arg6[%c0_33, %c0_34] : memref<128x128xf32, #tpu.memory_space<vmem>>, vector<128x128xf32>
    tpu.vector_store %arg6[%c0_33, %c0_34], %27 {strides = array<i32>} : memref<128x128xf32, #tpu.memory_space<vmem>>, vector<128x128xf32>,
    %c1_35 = arith.constant 1 : index
    %c0_36 = arith.constant 0 : index
    %c0_37 = arith.constant 0 : index
    %c0_38 = arith.constant 0 : index
    %29 = vector.load %arg2[%c1_35, %c0_36, %c0_37, %c0_38] : memref<3x8x24x128xbf16, #tpu.memory_space<vmem>>, vector<1x8x16x128xbf16>
    %30 = vector.shape_cast %29 : vector<1x8x16x128xbf16> to vector<8x16x128xbf16>
    %31 = vector.shape_cast %30 : vector<8x16x128xbf16> to vector<128x128xbf16>
    %c0_39 = arith.constant 0 : index
    %c0_40 = arith.constant 0 : index
    %32 = vector.load %arg6[%c0_39, %c0_40] : memref<128x128xf32, #tpu.memory_space<vmem>>, vector<128x128xf32>
    %c3 = arith.constant 3 : index
    %c0_41 = arith.constant 0 : index
    %c0_42 = arith.constant 0 : index
    %33 = vector.load %arg3[%c3, %c0_41, %c0_42] : memref<9x128x128xbf16, #tpu.memory_space<vmem>>, vector<1x128x128xbf16>
    %34 = vector.shape_cast %33 : vector<1x128x128xbf16> to vector<128x128xbf16>
    %cst_43 = arith.constant dense<0.000000e+00> : vector<128x128xf32>
    %35 = tpu.matmul %31, %34, %cst_43 {dimension_numbers = #tpu.dot_dimension_numbers<[1], [0], [0], [1], [0, 0, 1, 1], [], []>} : vector<128x128xbf16>, vector<128x128xbf16>, vector<128x128xf32> -> vector<128x128xf32>
    %36 = arith.addf %32, %35 : vector<128x128xf32>
    %c0_44 = arith.constant 0 : index
    %c0_45 = arith.constant 0 : index
    %37 = vector.load %arg6[%c0_44, %c0_45] : memref<128x128xf32, #tpu.memory_space<vmem>>, vector<128x128xf32>
    tpu.vector_store %arg6[%c0_44, %c0_45], %36 {strides = array<i32>} : memref<128x128xf32, #tpu.memory_space<vmem>>, vector<128x128xf32>,
    %c1_46 = arith.constant 1 : index
    %c0_47 = arith.constant 0 : index
    %c1_48 = arith.constant 1 : index
    %c0_49 = arith.constant 0 : index
    %38 = vector.load %arg2[%c1_46, %c0_47, %c1_48, %c0_49] : memref<3x8x24x128xbf16, #tpu.memory_space<vmem>>, vector<1x8x16x128xbf16>
    %39 = vector.shape_cast %38 : vector<1x8x16x128xbf16> to vector<8x16x128xbf16>
    %40 = vector.shape_cast %39 : vector<8x16x128xbf16> to vector<128x128xbf16>
    %c0_50 = arith.constant 0 : index
    %c0_51 = arith.constant 0 : index
    %41 = vector.load %arg6[%c0_50, %c0_51] : memref<128x128xf32, #tpu.memory_space<vmem>>, vector<128x128xf32>
    %c4 = arith.constant 4 : index
    %c0_52 = arith.constant 0 : index
    %c0_53 = arith.constant 0 : index
    %42 = vector.load %arg3[%c4, %c0_52, %c0_53] : memref<9x128x128xbf16, #tpu.memory_space<vmem>>, vector<1x128x128xbf16>
    %43 = vector.shape_cast %42 : vector<1x128x128xbf16> to vector<128x128xbf16>
    %cst_54 = arith.constant dense<0.000000e+00> : vector<128x128xf32>
    %44 = tpu.matmul %40, %43, %cst_54 {dimension_numbers = #tpu.dot_dimension_numbers<[1], [0], [0], [1], [0, 0, 1, 1], [], []>} : vector<128x128xbf16>, vector<128x128xbf16>, vector<128x128xf32> -> vector<128x128xf32>
    %45 = arith.addf %41, %44 : vector<128x128xf32>
    %c0_55 = arith.constant 0 : index
    %c0_56 = arith.constant 0 : index
    %46 = vector.load %arg6[%c0_55, %c0_56] : memref<128x128xf32, #tpu.memory_space<vmem>>, vector<128x128xf32>
    tpu.vector_store %arg6[%c0_55, %c0_56], %45 {strides = array<i32>} : memref<128x128xf32, #tpu.memory_space<vmem>>, vector<128x128xf32>,
    %c1_57 = arith.constant 1 : index
    %c0_58 = arith.constant 0 : index
    %c2_59 = arith.constant 2 : index
    %c0_60 = arith.constant 0 : index
    %47 = vector.load %arg2[%c1_57, %c0_58, %c2_59, %c0_60] : memref<3x8x24x128xbf16, #tpu.memory_space<vmem>>, vector<1x8x16x128xbf16>
    %48 = vector.shape_cast %47 : vector<1x8x16x128xbf16> to vector<8x16x128xbf16>
    %49 = vector.shape_cast %48 : vector<8x16x128xbf16> to vector<128x128xbf16>
    %c0_61 = arith.constant 0 : index
    %c0_62 = arith.constant 0 : index
    %50 = vector.load %arg6[%c0_61, %c0_62] : memref<128x128xf32, #tpu.memory_space<vmem>>, vector<128x128xf32>
    %c5 = arith.constant 5 : index
    %c0_63 = arith.constant 0 : index
    %c0_64 = arith.constant 0 : index
    %51 = vector.load %arg3[%c5, %c0_63, %c0_64] : memref<9x128x128xbf16, #tpu.memory_space<vmem>>, vector<1x128x128xbf16>
    %52 = vector.shape_cast %51 : vector<1x128x128xbf16> to vector<128x128xbf16>
    %cst_65 = arith.constant dense<0.000000e+00> : vector<128x128xf32>
    %53 = tpu.matmul %49, %52, %cst_65 {dimension_numbers = #tpu.dot_dimension_numbers<[1], [0], [0], [1], [0, 0, 1, 1], [], []>} : vector<128x128xbf16>, vector<128x128xbf16>, vector<128x128xf32> -> vector<128x128xf32>
    %54 = arith.addf %50, %53 : vector<128x128xf32>
    %c0_66 = arith.constant 0 : index
    %c0_67 = arith.constant 0 : index
    %55 = vector.load %arg6[%c0_66, %c0_67] : memref<128x128xf32, #tpu.memory_space<vmem>>, vector<128x128xf32>
    tpu.vector_store %arg6[%c0_66, %c0_67], %54 {strides = array<i32>} : memref<128x128xf32, #tpu.memory_space<vmem>>, vector<128x128xf32>,
    %c2_68 = arith.constant 2 : index
    %c0_69 = arith.constant 0 : index
    %c0_70 = arith.constant 0 : index
    %c0_71 = arith.constant 0 : index
    %56 = vector.load %arg2[%c2_68, %c0_69, %c0_70, %c0_71] : memref<3x8x24x128xbf16, #tpu.memory_space<vmem>>, vector<1x8x16x128xbf16>
    %57 = vector.shape_cast %56 : vector<1x8x16x128xbf16> to vector<8x16x128xbf16>
    %58 = vector.shape_cast %57 : vector<8x16x128xbf16> to vector<128x128xbf16>
    %c0_72 = arith.constant 0 : index
    %c0_73 = arith.constant 0 : index
    %59 = vector.load %arg6[%c0_72, %c0_73] : memref<128x128xf32, #tpu.memory_space<vmem>>, vector<128x128xf32>
    %c6 = arith.constant 6 : index
    %c0_74 = arith.constant 0 : index
    %c0_75 = arith.constant 0 : index
    %60 = vector.load %arg3[%c6, %c0_74, %c0_75] : memref<9x128x128xbf16, #tpu.memory_space<vmem>>, vector<1x128x128xbf16>
    %61 = vector.shape_cast %60 : vector<1x128x128xbf16> to vector<128x128xbf16>
    %cst_76 = arith.constant dense<0.000000e+00> : vector<128x128xf32>
    %62 = tpu.matmul %58, %61, %cst_76 {dimension_numbers = #tpu.dot_dimension_numbers<[1], [0], [0], [1], [0, 0, 1, 1], [], []>} : vector<128x128xbf16>, vector<128x128xbf16>, vector<128x128xf32> -> vector<128x128xf32>
    %63 = arith.addf %59, %62 : vector<128x128xf32>
    %c0_77 = arith.constant 0 : index
    %c0_78 = arith.constant 0 : index
    %64 = vector.load %arg6[%c0_77, %c0_78] : memref<128x128xf32, #tpu.memory_space<vmem>>, vector<128x128xf32>
    tpu.vector_store %arg6[%c0_77, %c0_78], %63 {strides = array<i32>} : memref<128x128xf32, #tpu.memory_space<vmem>>, vector<128x128xf32>,
    %c2_79 = arith.constant 2 : index
    %c0_80 = arith.constant 0 : index
    %c1_81 = arith.constant 1 : index
    %c0_82 = arith.constant 0 : index
    %65 = vector.load %arg2[%c2_79, %c0_80, %c1_81, %c0_82] : memref<3x8x24x128xbf16, #tpu.memory_space<vmem>>, vector<1x8x16x128xbf16>
    %66 = vector.shape_cast %65 : vector<1x8x16x128xbf16> to vector<8x16x128xbf16>
    %67 = vector.shape_cast %66 : vector<8x16x128xbf16> to vector<128x128xbf16>
    %c0_83 = arith.constant 0 : index
    %c0_84 = arith.constant 0 : index
    %68 = vector.load %arg6[%c0_83, %c0_84] : memref<128x128xf32, #tpu.memory_space<vmem>>, vector<128x128xf32>
    %c7 = arith.constant 7 : index
    %c0_85 = arith.constant 0 : index
    %c0_86 = arith.constant 0 : index
    %69 = vector.load %arg3[%c7, %c0_85, %c0_86] : memref<9x128x128xbf16, #tpu.memory_space<vmem>>, vector<1x128x128xbf16>
    %70 = vector.shape_cast %69 : vector<1x128x128xbf16> to vector<128x128xbf16>
    %cst_87 = arith.constant dense<0.000000e+00> : vector<128x128xf32>
    %71 = tpu.matmul %67, %70, %cst_87 {dimension_numbers = #tpu.dot_dimension_numbers<[1], [0], [0], [1], [0, 0, 1, 1], [], []>} : vector<128x128xbf16>, vector<128x128xbf16>, vector<128x128xf32> -> vector<128x128xf32>
    %72 = arith.addf %68, %71 : vector<128x128xf32>
    %c0_88 = arith.constant 0 : index
    %c0_89 = arith.constant 0 : index
    %73 = vector.load %arg6[%c0_88, %c0_89] : memref<128x128xf32, #tpu.memory_space<vmem>>, vector<128x128xf32>
    tpu.vector_store %arg6[%c0_88, %c0_89], %72 {strides = array<i32>} : memref<128x128xf32, #tpu.memory_space<vmem>>, vector<128x128xf32>,
    %c2_90 = arith.constant 2 : index
    %c0_91 = arith.constant 0 : index
    %c2_92 = arith.constant 2 : index
    %c0_93 = arith.constant 0 : index
    %74 = vector.load %arg2[%c2_90, %c0_91, %c2_92, %c0_93] : memref<3x8x24x128xbf16, #tpu.memory_space<vmem>>, vector<1x8x16x128xbf16>
    %75 = vector.shape_cast %74 : vector<1x8x16x128xbf16> to vector<8x16x128xbf16>
    %76 = vector.shape_cast %75 : vector<8x16x128xbf16> to vector<128x128xbf16>
    %c0_94 = arith.constant 0 : index
    %c0_95 = arith.constant 0 : index
    %77 = vector.load %arg6[%c0_94, %c0_95] : memref<128x128xf32, #tpu.memory_space<vmem>>, vector<128x128xf32>
    %c8 = arith.constant 8 : index
    %c0_96 = arith.constant 0 : index
    %c0_97 = arith.constant 0 : index
    %78 = vector.load %arg3[%c8, %c0_96, %c0_97] : memref<9x128x128xbf16, #tpu.memory_space<vmem>>, vector<1x128x128xbf16>
    %79 = vector.shape_cast %78 : vector<1x128x128xbf16> to vector<128x128xbf16>
    %cst_98 = arith.constant dense<0.000000e+00> : vector<128x128xf32>
    %80 = tpu.matmul %76, %79, %cst_98 {dimension_numbers = #tpu.dot_dimension_numbers<[1], [0], [0], [1], [0, 0, 1, 1], [], []>} : vector<128x128xbf16>, vector<128x128xbf16>, vector<128x128xf32> -> vector<128x128xf32>
    %81 = arith.addf %77, %80 : vector<128x128xf32>
    %c0_99 = arith.constant 0 : index
    %c0_100 = arith.constant 0 : index
    %82 = vector.load %arg6[%c0_99, %c0_100] : memref<128x128xf32, #tpu.memory_space<vmem>>, vector<128x128xf32>
    tpu.vector_store %arg6[%c0_99, %c0_100], %81 {strides = array<i32>} : memref<128x128xf32, #tpu.memory_space<vmem>>, vector<128x128xf32>,
    %c0_101 = arith.constant 0 : index
    %c0_102 = arith.constant 0 : index
    %83 = vector.load %arg6[%c0_101, %c0_102] : memref<128x128xf32, #tpu.memory_space<vmem>>, vector<128x128xf32>
    %84 = arith.truncf %83 : vector<128x128xf32> to vector<128x128xbf16>
    %c0_103 = arith.constant 0 : index
    %c0_104 = arith.constant 0 : index
    %c0_105 = arith.constant 0 : index
    %85 = vector.load %arg4[%c0_103, %c0_104, %c0_105] : memref<1x128x128xbf16, #tpu.memory_space<vmem>>, vector<1x128x128xbf16>
    %86 = vector.shape_cast %85 : vector<1x128x128xbf16> to vector<128x128xbf16>
    %87 = vector.shape_cast %84 : vector<128x128xbf16> to vector<1x128x128xbf16>
    tpu.vector_store %arg4[%c0_103, %c0_104, %c0_105], %87 {strides = array<i32>} : memref<1x128x128xbf16, #tpu.memory_space<vmem>>, vector<1x128x128xbf16>,
    %cst_106 = arith.constant dense<0.000000e+00> : vector<128xf32>
    %88 = vector.multi_reduction <add>, %83, %cst_106 [0] : vector<128x128xf32> to vector<128xf32>
    %89 = vector.shape_cast %88 : vector<128xf32> to vector<1x128xf32>
    %90 = arith.mulf %83, %83 : vector<128x128xf32>
    %cst_107 = arith.constant dense<0.000000e+00> : vector<128xf32>
    %91 = vector.multi_reduction <add>, %90, %cst_107 [0] : vector<128x128xf32> to vector<128xf32>
    %92 = vector.shape_cast %91 : vector<128xf32> to vector<1x128xf32>
    %93 = tpu.concatenate %89, %92 in 0 : vector<1x128xf32>, vector<1x128xf32> -> vector<2x128xf32>
    %c0_108 = arith.constant 0 : index
    %c0_109 = arith.constant 0 : index
    %c0_110 = arith.constant 0 : index
    %c0_111 = arith.constant 0 : index
    %94 = vector.load %arg5[%c0_108, %c0_109, %c0_110, %c0_111] : memref<1x1x2x128xf32, #tpu.memory_space<vmem>>, vector<1x1x2x128xf32>
    %95 = vector.shape_cast %94 : vector<1x1x2x128xf32> to vector<2x128xf32>
    %96 = vector.shape_cast %93 : vector<2x128xf32> to vector<1x1x2x128xf32>
    tpu.vector_store %arg5[%c0_108, %c0_109, %c0_110, %c0_111], %96 {strides = array<i32>} : memref<1x1x2x128xf32, #tpu.memory_space<vmem>>, vector<1x1x2x128xf32>,
    return
  }
  func.func @transform_0(%arg0: i32, %arg1: i32) -> (i32, i32, i32, i32) {
    %c0_i32 = arith.constant 0 : i32
    %c0_i32_0 = arith.constant 0 : i32
    %c0_i32_1 = arith.constant 0 : i32
    return %arg0, %arg1, %c0_i32, %c0_i32_0 : i32, i32, i32, i32
  }
  func.func @transform_1(%arg0: i32, %arg1: i32) -> (i32, i32, i32) {
    %c0_i32 = arith.constant 0 : i32
    %c0_i32_0 = arith.constant 0 : i32
    %c0_i32_1 = arith.constant 0 : i32
    %c0_i32_2 = arith.constant 0 : i32
    return %c0_i32, %c0_i32_0, %c0_i32_1 : i32, i32, i32
  }
  func.func @transform_2(%arg0: i32, %arg1: i32) -> (i32, i32, i32) {
    %c0_i32 = arith.constant 0 : i32
    %c0_i32_0 = arith.constant 0 : i32
    return %arg0, %arg1, %c0_i32 : i32, i32, i32
  }
  func.func @transform_3(%arg0: i32, %arg1: i32) -> (i32, i32, i32, i32) {
    %c0_i32 = arith.constant 0 : i32
    %c0_i32_0 = arith.constant 0 : i32
    %c0_i32_1 = arith.constant 0 : i32
    return %arg0, %arg1, %c0_i32, %c0_i32_0 : i32, i32, i32, i32
  }
}

</mosaic_0001>

<bundles_post_ra>
// kernel: tpu_custom_call.1
= control target key start
LH: loop header
LB: loop body
LE: loop exit
PB: predicated region body
PF: predicated region fallthrough
CT: control target
= control target key end

     0   :  { %s5965_s0 = inlined_call_operand.hbm [shape: bf16[6,16,24,128], index: 0, kind: input, shape index: {}]   ;;  %s5966_s1 = inlined_call_operand.hbm [shape: bf16[9,128,128], index: 1, kind: input, shape index: {}]   ;;  %s5967_s2 = inlined_call_operand.hbm [shape: bf16[2,256,128], index: 2, kind: output, shape index: {0}]   ;;  %s5968_s3 = inlined_call_operand.hbm [shape: f32[2,2,2,128], index: 3, kind: output, shape index: {1}]  }
   0x1   :  { %5979 = sst [smem:[#allocation23_spill]] %s5966_s1 }
   0x2   :  { %9 = vsyncpa [#allocation4], 0 }
   0x3   :  { %11 = vsyncpa [#allocation4 + $0x1], 0 }
   0x4   :  { %12 = vsyncpa [#allocation7], 0 }
   0x5   :  { %13 = vsyncpa [#allocation5], 0 }
   0x6   :  { %15 = vsyncpa [#allocation5 + $0x1], 0 }
   0x7   :  { %16 = vsyncpa [#allocation10], 0 }
   0x8   :  { %18 = vsyncpa [#allocation10 + $0x1], 0  ;;  %s5228_s12 = smov 0   ;;  %s5230_s13 = smov 0  }
   0x9   :  { %s5232_s14 = smov 0   ;;  %s5234_s15 = smov 0  }
   0xa   :  { %s5236_s16 = smov 0   ;;  %s5238_s17 = smov 0  }
   0xb   :  { %s5240_s18 = smov 0   ;;  %s5242_s19 = smov 0  }
   0xc LB: > { %5980 = sst [smem:[#allocation18_spill]] %s5185_s17  ;;  %s3850_s20 = sadd.s32 4294967295, %s5193_s19   ;;  %s5193_s19 = sphi %s5242_s19, %s24_s19   ;;  %s5189_s18 = sphi %s5240_s18, %s6007_s18   ;;  %s5185_s17 = sphi %s5238_s17, %s6006_s17   ;;  %s5181_s16 = sphi %s5236_s16, %s6005_s16   ;;  %s5177_s15 = sphi %s5234_s15, %s6004_s15   ;;  %s5173_s14 = sphi %s5232_s14, %s6010_s14   ;;  %s5169_s13 = sphi %s5230_s13, %s6009_s13   ;;  %s5165_s12 = sphi %s5228_s12, %s6008_s12  }
   0xd   : > { %5981 = sst [smem:[#allocation19_spill]] %s5189_s18  ;;  %s3851_s21 = sadd.s32 4294967294, %s5193_s19  }
   0xe   : > { %s33_s22 = sadd.s32 1, %s5185_s17  ;;  %s36_s23 = sadd.s32 1, %s5189_s18 }
   0xf   : > { %p34_p0 = scmp.ge.s32.totalorder %s33_s22, 2  ;;  %s45_s24 = sadd.s32 1, %s5173_s14 }
  0x10   : > { %p52_p1 = scmp.ne.s32.totalorder %s5173_s14, %s5169_s13  ;;  %p53_p2 = scmp.eq.s32.totalorder %s5193_s19, 0 }
  0x11   : > { %s6012_s22 = smov (%p34_p0, %s33_s22), 0  ;;  %s6014_s23 = smov (!%p34_p0, %s36_s23), %s5189_s18 }
  0x12   : > { %5982 = sst [smem:[#allocation20_spill]] %s6012_s22  ;;  %s41_s25 = ssub.s32 %s5185_s17, %s6012_s22 }
  0x13   : > { %p5281_p3 = por %p53_p2, %p52_p1  ;;  %p38_p4 = scmp.ge.s32.totalorder %s6014_s23, 2 }
  0x14   : > { %p58_p5 = scmp.ne.s32.totalorder %s5169_s13, %s5165_s12  ;;  %p5287_p6 = scmp.eq.s32.totalorder %s3850_s20, 0 }
  0x15   : > { %s5983_s26 = scalar_select %p5281_p3, 1, 0 }
  0x16   : > { %s5984_s27 = scalar_select %p5287_p6, 1, 0 }
  0x17   : > { %p105_p7 = scmp.eq.s32.totalorder %s3850_s20, 3  ;;  %s6016_s23 = smov (%p38_p4, %s6014_s23), 0 }
  0x18   : > { %5985 = sst [smem:[#allocation21_spill]] %s6016_s23  ;;  %p5295_p8 = por %p5287_p6, %p58_p5 }
  0x19   : > { %p5299_p9 = por %p105_p7, %p52_p1  ;;  %s40_s30 = ssub.s32 %s5189_s18, %s6016_s23 }
  0x1a   : > { %s5986_s28 = scalar_select %p5295_p8, 1, 0 }
  0x1b   : > { %s5987_s29 = scalar_select %p5299_p9, 1, 0 }
  0x1c   : > { %p111_p10 = scmp.eq.s32.totalorder %s3851_s21, 3  ;;  %s42_s4 = sor.u32 %s41_s25, %s40_s30 }
  0x1d   : > { %p3852_p11 = scmp.ge.s32.totalorder %s5193_s19, 1  ;;  %p43_p12 = scmp.eq.s32.totalorder %s42_s4, 0 }
  0x1e   : > { %p5306_p13 = por %p111_p10, %p58_p5  ;;  %p146_p0 = scmp.lt.s32.totalorder %s5193_s19, 5 }
  0x1f   : > { %s5312_s6 = scalar_select %p43_p12, %s5173_s14, %s45_s24  }
  0x20   : > { %s5988_s5 = scalar_select %p5306_p13, 1, 0 }
  0x21   : > { %5989 = sst [smem:[#allocation22_spill]] %s5312_s6  ;;  %p5314_p2 = pnand %p3852_p11, %p146_p0 }
  0x22   : > { %s5195_s8 = smov [#allocation6]   ;;  %s5992_s1 = sld [smem:[#allocation23_spill]] }
  0x23   : > { %s5990_s7 = scalar_select %p5314_p2, 1, 0 }
  0x24   : > { %s158_s9 = sshll.u32 %s5195_s8, 4  ;;  %p4845_p1 = pneg %p5314_p2  ;;  %s159_s9 = int_to_ptr.vmem [resolvable:$true] %s158_s9 }
  0x26   : > { %p5322_p4 = pnand %p4845_p1, %p5287_p6 }
  0x28   : > { %s5031_s21 = scalar_lea.hbm %s5992_s1, 9216  ;;  %p5033_p7 = pneg %p5322_p4 }
  0x29   : > { %p5032_p5 = scmp.ne.s32.totalorder %s5992_s1, %s5031_s21  ;;  %p5038_p12 = scmp.lt.u32.totalorder %s5031_s21, %s5992_s1 }
  0x2b   : > { %p5034_p10 = pnand %p5033_p7, %p5032_p5 }
  0x2d   : > { %p5035_p11 = pneg %p5034_p10 }
  0x2f   : > { %p5040_p0 = pnand %p5038_p12, %p5035_p11 }
  0x31   : > { %5043 = shalt.err (!%p5040_p0)
}
  0x32   : > { %s5044_s8 = scalar_lea.vmem %s159_s9, 9216  ;;  %p5052_p6 = scmp.lt.s32.totalorder %s159_s9, %s159_s9 }
  0x33   : > { %p5045_p1 = scmp.ne.s32.totalorder %s159_s9, %s5044_s8  ;;  %p5053_p8 = scmp.lt.s32.totalorder %s5044_s8, %s5044_s8 }
  0x35   : > { %p5047_p13 = pnand %p5045_p1, %p5033_p7  ;;  %p5054_p2 = por %p5053_p8, %p5052_p6 }
  0x37   : > { %p5048_p9 = pneg %p5047_p13 }
  0x39   : > { %p5055_p3 = pnand %p5054_p2, %p5048_p9 }
  0x3b   : > { %5058 = shalt.err (!%p5055_p3)
}
  0x3c   : > { %s5196_s11 = smov 64   ;;  %s5197_s20 = smov 4  }
  0x3d   : > { %4848 = dma.hbm_to_vmem [thread:$0]  (!%p5322_p4), %s5992_s1, 9216, %s159_s9, [#allocation7], %s5196_s11, %s5196_s11, %s5197_s20  }
  0x3e   : > { %p3854_p5 = scmp.ge.s32.totalorder %s5193_s19, 4 }
  0x40   : > { %168 = sbr.rel (%p3854_p5) target bundleno = 86 (0x56), region = 20 }
  0x47   : > { %s172_s21 = sand.u32 1, %s5173_s14   ;;  %s4825_s4 = smul.u32 24, %s5185_s17 }
  0x48   : > { %s4824_s30 = smul.u32 288, %s172_s21  ;;  %p5993_p3 = scmp.ne.s32.totalorder %s5983_s26, 0 }
  0x49   : > { %s4857_s8 = smul.u32 144, %s5189_s18  ;;  %s5198_s6 = smov 3072  }
  0x4a   : > { %s4830_s10 = scalar_select %p5993_p3, [#allocation0], [#allocation13] }
  0x4b   : > { %s184_s23 = sadd.s32 %s4857_s8, %s4825_s4  ;;  %s176_s9 = scalar_lea.vmem [#allocation3], %s4824_s30 }
  0x4c   : > { %s199_s11 = sshll.u32 %s176_s9, 4  ;;  %s3857_s20 = sshll.u32 %s184_s23, 6  ;;  %s200_s11 = int_to_ptr.vmem [resolvable:$true] %s199_s11 }
  0x4d   : > { %s191_s24 = sld [smem:[%s4830_s10]]   ;;  %s186_s22 = scalar_lea.hbm %s5965_s0, %s3857_s20 }
  0x4e   : > { %4831 = sst [smem:[#allocation12]] (%p5993_p3), %s5198_s6  ;;  %s5199_s18 = smov 1536  }
  0x4f   : > { %4832 = sst [smem:[#allocation12 + $0x1]] (%p5993_p3), %s5199_s18  ;;  %s5200_s17 = smov 24  }
  0x50   : > { %4833 = sst [smem:[#allocation12 + $0x2]] (%p5993_p3), %s5200_s17  ;;  %s5201_s30 = smov 64  }
  0x51   : > { %4834 = sst [smem:[#allocation12 + $0x3]] (%p5993_p3), %s5201_s30  ;;  %s5202_s1 = smov 4  }
  0x52   : > { %4835 = sst [smem:[#allocation12 + $0x4]] (%p5993_p3), %s5201_s30  ;;  %s173_s8 = scalar_lea.sflag [#allocation4], %s172_s21 }
  0x53   : > { %s3858_s23 = sshll.u32 %s191_s24, 26  ;;  %4836 = sst [smem:[#allocation12 + $0x5]] (%p5993_p3), %s5202_s1 }
  0x54   : > { %s3859_s4 = sadd.s32 134217728, %s3858_s23  ;;  %s5203_s10 = smov [#allocation11]  }
  0x55   : > { %4837 = dma.general (%p5993_p3), %s186_s22, 4608, %s200_s11, %s173_s8, %s5203_s10, [#allocation12], %s3859_s4, 0  }
  0x56 PF: > { %p5994_p6 = scmp.ne.s32.totalorder %s5990_s7, 0 }
  0x57   : > { %s5368_s17 = sand.u32 (!%p5994_p6), 1, %s5169_s13   ;;  %p5995_p8 = scmp.ne.s32.totalorder (!%p5994_p6), %s5986_s28, 0 }
  0x58   : > { %224 = sbr.rel (%p5994_p6) target bundleno = 562 (0x232), region = 28  ;;  %s227_s6 = scalar_lea.sflag (!%p5994_p6), [#allocation4], %s5368_s17 }
  0x59   : > { %s4827_s18 = smul.u32 (!%p5994_p6), 288, %s5368_s17 }
  0x5b   : > { %s5372_s9 = scalar_lea.vmem (!%p5994_p6), [#allocation3], %s4827_s18 }
  0x5f   : > { %5148 = dma.done.wait (%p5995_p8), %s227_s6, 4608  }
  0x60   : > { %5150 = vsyncadd (%p5995_p8), %s227_s6, 4294962688  ;;  %p5996_p9 = scmp.ne.s32.totalorder %s5984_s27, 0 }
  0x62   : > { %5152 = dma.done.wait (%p5996_p9), [#allocation7], 9216  }
  0x63   : > { %5154 = vsyncadd (%p5996_p9), [#allocation7], 4294958080  ;;  %v4935_v0 = vld [vmem:[#allocation6] sm:$0xff]   ;;  %v4937_v2 = vld [vmem:[#allocation6 + $0x8] sm:$0xff]   ;;  %vm579_vm0 = vsmask.f32 3328 }
  0x64   : > { %v4936_v1 = vld [vmem:[#allocation6 + $0x100] sm:$0xff]   ;;  %4392 = vmatprep.subr.bf16.mxu1 %v4935_v0  ;;  %v4938_v3 = vld [vmem:[#allocation6 + $0x108] sm:$0xff]   ;;  %v4939_v4 = vld [vmem:[#allocation6 + $0x10] sm:$0xff]   ;;  %vm580_vm1 = vsmask.f32 7440  ;;  %vm1064_vm3 = vcmask 1042432  }
  0x65   : > { %4520 = vmatprep.subr.bf16.mxu0 %v4936_v1  ;;  %4393 = vmatpush3.bf16.msra.mxu1 %v4935_v0  ;;  %v4940_v5 = vld [vmem:[#allocation6 + $0x110] sm:$0xff]   ;;  %v4941_v6 = vld [vmem:[#allocation6 + $0x18] sm:$0xff]   ;;  %v4943_v8 = vld [vmem:[#allocation6 + $0x20] sm:$0xff]   ;;  %vm1065_vm4 = vcmask 1046532   ;;  %s3862_s22 = sshll.u32 %s5368_s17, 6  ;;  %s4178_s27 = sshll.u32 %s5177_s15, 4 }
  0x66   : > { %4521 = vmatpush3.bf16.msra.mxu0 %v4936_v1  ;;  %4394 = vmatprep.subr.bf16.mxu1 %v4937_v2  ;;  %v4942_v7 = vld [vmem:[#allocation6 + $0x118] sm:$0xff]   ;;  %v4944_v9 = vld [vmem:[#allocation6 + $0x120] sm:$0xff]   ;;  %v4945_v10 = vld [vmem:[#allocation6 + $0x28] sm:$0xff]   ;;  %s5827_s26 = scalar_lea.vmem [#allocation8], %s3862_s22  ;;  %s4179_s28 = sshll.u32 %s5181_s16, 5 }
  0x67   : > { %4522 = vmatprep.subr.bf16.mxu0 %v4938_v3  ;;  %v4946_v11 = vld [vmem:[#allocation6 + $0x128] sm:$0xff]   ;;  %v4951_v12 = vld [vmem:[%s5372_s9] sm:$0xff]   ;;  %v4947_v20 = vld [vmem:[#allocation6 + $0x30] sm:$0xff]   ;;  %s3698_s7 = sadd.s32 %s4179_s28, %s4178_s27  ;;  %s3701_s21 = sshll.u32 %s5827_s26, 4  ;;  %s5849_s21 = int_to_ptr.vmem [resolvable:$true] %s3701_s21 }
  0x68   : > { %v3952_v13 = vld [vmem:[%s5372_s9 + $0x60] sm:$0xf]  ;;  %v3953_v14 = vld [vmem:[%s5372_s9 + $0x64] sm:$0xf]  ;;  %v3954_v15 = vld [vmem:[%s5372_s9 + $0x68] sm:$0x1]  ;;  %4408 = vmatprep.mubr.bf16.mxu1 %v4951_v12 }
  0x69   : > { %4395 = vmatpush3.bf16.msra.mxu1 %v4937_v2  ;;  %v1665_v16 = vshrl.u32 %v3952_v13, 16  ;;  %v1668_v17 = vshll.u32 %v3952_v13, 16  ;;  %v1674_v18 = vshll.u32 %v3953_v14, 16  ;;  %v1678_v19 = vshrl.u32 %v3953_v14, 16  ;;  %v4948_v26 = vld [vmem:[#allocation6 + $0x130] sm:$0xff]   ;;  %v4949_v35 = vld [vmem:[#allocation6 + $0x38] sm:$0xff]   ;;  %vm5391_vm2 = vmor %vm579_vm0, %vm580_vm1 }
  0x6a   : > { %4523 = vmatpush3.bf16.msra.mxu0 %v4938_v3  ;;  %4396 = vmatprep.subr.bf16.mxu1 %v4939_v4  ;;  %v1684_v21 = vshll.u32 %v3954_v15, 16  ;;  %v3955_v28 = vld [vmem:[%s5372_s9 + $0x6c] sm:$0xf]  ;;  %v3956_v29 = vld [vmem:[%s5372_s9 + $0x70] sm:$0xf]  ;;  %v4950_v44 = vld [vmem:[#allocation6 + $0x138] sm:$0xff]  }
  0x6b   : > { %4524 = vmatprep.subr.bf16.mxu0 %v4940_v5  ;;  %v1667_v22 = vrot.slane %v1665_v16, 4  ;;  %v1670_v23 = vrot.slane %v1668_v17, 5  ;;  %v1676_v24 = vrot.slane %v1674_v18, 5  ;;  %v1680_v25 = vrot.slane %v1678_v19, 4  ;;  %v3957_v32 = vld [vmem:[%s5372_s9 + $0x74] sm:$0x1]  ;;  %vm5457_vm5 = vmor %vm1064_vm3, %vm1065_vm4 }
  0x6c   : > { %v1686_v27 = vrot.slane %v1684_v21, 5  ;;  %v1689_v33 = vshrl.u32 %v3955_v28, 16  ;;  %v1692_v34 = vshll.u32 %v3955_v28, 16  ;;  %v1698_v37 = vshll.u32 %v3956_v29, 16  ;;  %v4953_v51 = vld [vmem:[#allocation6 + $0x40] sm:$0xff]   ;;  %v4952_v54 = vld [vmem:[%s5372_s9 + $0xc] sm:$0xff]  }
  0x6d   : > { %4397 = vmatpush3.bf16.msra.mxu1 %v4939_v4  ;;  %v1671_v30 = vor.u32 %v1670_v23, %v1667_v22  ;;  %v1681_v31 = vor.u32 %v1680_v25, %v1676_v24  ;;  %v1702_v38 = vshrl.u32 %v3956_v29, 16  ;;  %v1708_v39 = vshll.u32 %v3957_v32, 16  ;;  %v4954_v56 = vld [vmem:[#allocation6 + $0x140] sm:$0xff]   ;;  %v3958_v57 = vld [vmem:[%s5372_s9 + $0x78] sm:$0xf]  ;;  %v4955_v1 = vld [vmem:[#allocation6 + $0x48] sm:$0xff]  }
  0x6e   : > { %4525 = vmatpush3.bf16.msra.mxu0 %v4940_v5  ;;  %4398 = vmatprep.subr.bf16.mxu1 %v4941_v6  ;;  %v1691_v42 = vrot.slane %v1689_v33, 4  ;;  %v1694_v43 = vrot.slane %v1692_v34, 5  ;;  %v1700_v45 = vrot.slane %v1698_v37, 5  ;;  %v3959_v58 = vld [vmem:[%s5372_s9 + $0x7c] sm:$0xf]  ;;  %v1713_v61 = vshrl.u32 %v3958_v57, 16 }
  0x6f   : > { %4526 = vmatprep.subr.bf16.mxu0 %v4942_v7  ;;  %v1672_v40 = vrot.slane %v1671_v30, 4  ;;  %v1682_v41 = vrot.slane %v1681_v31, 4  ;;  %v1704_v46 = vrot.slane %v1702_v38, 4  ;;  %v1710_v53 = vrot.slane %v1708_v39, 5  ;;  %v3960_v60 = vld [vmem:[%s5372_s9 + $0x80] sm:$0x1] }
  0x70   : > { %v1695_v49 = vor.u32 %v1694_v43, %v1691_v42  ;;  %v1716_v62 = vshll.u32 %v3958_v57, 16  ;;  %v1722_v63 = vshll.u32 %v3959_v58, 16  ;;  %v1726_v2 = vshrl.u32 %v3959_v58, 16  ;;  %v4956_v5 = vld [vmem:[#allocation6 + $0x148] sm:$0xff]   ;;  %v3961_v13 = vld [vmem:[%s5372_s9 + $0x84] sm:$0xf] }
  0x71   : > { %4399 = vmatpush3.bf16.msra.mxu1 %v4941_v6  ;;  %v1677_v47 = vsel %vm5391_vm2, %v1672_v40, %v1676_v24  ;;  %v1687_v48 = vsel %vm5391_vm2, %v1682_v41, %v1686_v27  ;;  %v1705_v52 = vor.u32 %v1704_v46, %v1700_v45  ;;  %v1732_v3 = vshll.u32 %v3960_v60, 16  ;;  %v4957_v6 = vld [vmem:[%s5372_s9 + $0x18] sm:$0xff]   ;;  %v3962_v15 = vld [vmem:[%s5372_s9 + $0x88] sm:$0xf]  ;;  %v3963_v16 = vld [vmem:[%s5372_s9 + $0x8c] sm:$0x1] }
  0x72   : > { %4527 = vmatpush3.bf16.msra.mxu0 %v4942_v7  ;;  %4400 = vmatprep.subr.bf16.mxu1 %v4943_v8  ;;  %v3976_v50 = vcombine.low %v1677_v47, %v1687_v48  ;;  %v1696_v55 = vrot.slane %v1695_v49, 4  ;;  %v1715_v7 = vrot.slane %v1713_v61, 4  ;;  %v1737_v17 = vshrl.u32 %v3961_v13, 16  ;;  %v4959_v24 = vld [vmem:[#allocation6 + $0x50] sm:$0xff]   ;;  %v4958_v28 = vld [vmem:[%s5372_s9 + $0x24] sm:$0xff]   ;;  %v4961_v38 = vld [vmem:[#allocation6 + $0x58] sm:$0xff]  }
  0x73   : > { %4528 = vmatprep.subr.bf16.mxu0 %v4944_v9  ;;  %v1706_v59 = vrot.slane %v1705_v52, 4  ;;  %v1734_v12 = vrot.slane %v1732_v3, 5  ;;  %v1740_v18 = vshll.u32 %v3961_v13, 16  ;;  %v1750_v21 = vshrl.u32 %v3962_v15, 16  ;;  %v4960_v31 = vld [vmem:[#allocation6 + $0x150] sm:$0xff]   ;;  %v4962_v41 = vld [vmem:[#allocation6 + $0x158] sm:$0xff]  }
  0x74   : > { %4536 = vmatprep.mubr.bf16.mxu0 %v3976_v50  ;;  %v1701_v0 = vsel %vm5391_vm2, %v1696_v55, %v1700_v45  ;;  %v1756_v22 = vshll.u32 %v3963_v16, 16  ;;  %v1739_v25 = vrot.slane %v1737_v17, 4  ;;  %v4963_v42 = vld [vmem:[%s5372_s9 + $0x30] sm:$0xff]   ;;  %v3966_v46 = vld [vmem:[%s5372_s9 + $0x98] sm:$0x1]  ;;  %v4965_v60 = vld [vmem:[#allocation6 + $0x60] sm:$0xff]  }
  0x75   : > { %4401 = vmatpush3.bf16.msra.mxu1 %v4943_v8  ;;  %v1711_v4 = vsel %vm5391_vm2, %v1706_v59, %v1710_v53  ;;  %v1718_v8 = vrot.slane %v1716_v62, 5  ;;  %v1752_v30 = vrot.slane %v1750_v21, 4  ;;  %v3964_v43 = vld [vmem:[%s5372_s9 + $0x90] sm:$0xf]  ;;  %v1780_v52 = vshll.u32 %v3966_v46, 16  ;;  %v4968_v17 = vld [vmem:[#allocation6 + $0x168] sm:$0xff]  }
  0x76   : > { %4529 = vmatpush3.bf16.msra.mxu0 %v4944_v9  ;;  %4402 = vmatprep.subr.bf16.mxu1 %v4945_v10  ;;  %v1724_v9 = vrot.slane %v1722_v63, 5  ;;  %v1758_v37 = vrot.slane %v1756_v22, 5  ;;  %v1761_v47 = vshrl.u32 %v3964_v43, 16  ;;  %v1764_v48 = vshll.u32 %v3964_v43, 16  ;;  %v3967_v62 = vld [vmem:[%s5372_s9 + $0x9c] sm:$0xf] }
  0x77   : > { %4530 = vmatprep.subr.bf16.mxu0 %v4946_v11  ;;  %v1719_v14 = vor.u32 %v1718_v8, %v1715_v7  ;;  %v1782_v59 = vrot.slane %v1780_v52, 5  ;;  %v3968_v63 = vld [vmem:[%s5372_s9 + $0xa0] sm:$0xf]  ;;  %v1788_v3 = vshll.u32 %v3967_v62, 16  ;;  %v3973_v46 = vld [vmem:[%s5372_s9 + $0xb4] sm:$0xf] }
  0x78   : > { %v1766_v55 = vrot.slane %v1764_v48, 5  ;;  %v4964_v7 = vld [vmem:[%s5372_s9 + $0x3c] sm:$0xff]   ;;  %v1798_v8 = vshrl.u32 %v3968_v63, 16  ;;  %s4180_s11 = sshll.u32 %s3698_s7, 6  ;;  %s3681_s30 = scalar_lea.sflag [#allocation5], %s5368_s17 }
  0x79   : > { %4403 = vmatpush3.bf16.msra.mxu1 %v4945_v10  ;;  %v3977_v10 = vcombine.low %v1701_v0, %v1711_v4  ;;  %v1720_v23 = vrot.slane %v1719_v14, 4  ;;  %v3969_v0 = vld [vmem:[%s5372_s9 + $0xa4] sm:$0x1]  ;;  %v1794_v4 = vshll.u32 %v3968_v63, 16  ;;  %v4967_v14 = vld [vmem:[#allocation6 + $0x68] sm:$0xff]   ;;  %s5856_s25 = scalar_lea.hbm %s5967_s2, %s4180_s11  ;;  %s5059_s23 = scalar_lea.vmem %s5849_s21, 1024 }
  0x7a   : > { %4531 = vmatpush3.bf16.msra.mxu0 %v4946_v11  ;;  %4404 = vmatprep.subr.bf16.mxu1 %v4947_v20  ;;  %v1728_v11 = vrot.slane %v1726_v2, 4  ;;  %v1785_v2 = vshrl.u32 %v3967_v62, 16  ;;  %v1800_v16 = vrot.slane %v1798_v8, 4  ;;  %v3975_v48 = vld [vmem:[%s5372_s9 + $0xbc] sm:$0x1]  ;;  %p5060_p13 = scmp.ne.s32.totalorder %s5849_s21, %s5059_s23  ;;  %p6001_p2 = scmp.ne.s32.totalorder %s5987_s29, 0 }
  0x7b   : > { %4532 = vmatprep.subr.bf16.mxu0 %v4948_v26  ;;  %v1725_v32 = vsel %vm5391_vm2, %v1720_v23, %v1724_v9  ;;  %v1796_v13 = vrot.slane %v1794_v4, 5  ;;  %v4969_v23 = vld [vmem:[%s5372_s9 + $0x48] sm:$0xff]   ;;  %v555_v4 = vld [vmem:[%s5372_s9] sm:$0xf]  ;;  %s5204_s4 = smov [#allocation8]  }
  0x7c   : > { %v1729_v19 = vor.u32 %v1728_v11, %v1724_v9  ;;  %v1804_v9 = vshll.u32 %v3969_v0, 16  ;;  %v1787_v11 = vrot.slane %v1785_v2, 4  ;;  %v557_v8 = vld [vmem:[%s5372_s9 + $0x8] sm:$0x1]  ;;  %p5061_p4 = pnand %p5060_p13, %p6001_p2  ;;  %s5063_s1 = sshll.u32 %s5204_s4, 4  ;;  %s5064_s1 = int_to_ptr.vmem [resolvable:$false] %s5063_s1 }
  0x7d   : > { %4405 = vmatpush3.bf16.msra.mxu1 %v4947_v20  ;;  %v1746_v20 = vshll.u32 %v3962_v15, 16  ;;  %v1801_v21 = vor.u32 %v1800_v16, %v1796_v13  ;;  %s5065_s8 = scalar_lea.vmem %s5064_s1, 2048  ;;  %p5066_p10 = scmp.lt.s32.totalorder %s5849_s21, %s5064_s1 }
  0x7e   : > { %4533 = vmatpush3.bf16.msra.mxu0 %v4948_v26  ;;  %4406 = vmatprep.subr.bf16.mxu1 %v4949_v35  ;;  %v1742_v26 = vrot.slane %v1740_v18, 5  ;;  %v1730_v27 = vrot.slane %v1729_v19, 4  ;;  %v1806_v22 = vrot.slane %v1804_v9, 5  ;;  %v583_v9 = vshrl.u32 %v555_v4, 16  ;;  %p5062_p7 = pneg %p5061_p4  ;;  %p5067_p11 = scmp.lt.s32.totalorder %s5065_s8, %s5059_s23 }
  0x7f   : > { %4534 = vmatprep.subr.bf16.mxu0 %v4950_v44  ;;  %v1748_v29 = vrot.slane %v1746_v20, 5 }
  0x80   : > { %v1743_v33 = vor.u32 %v1742_v26, %v1739_v25  ;;  %v1735_v34 = vsel %vm5391_vm2, %v1730_v27, %v1734_v12  ;;  %v1790_v12 = vrot.slane %v1788_v3, 5  ;;  %v3971_v25 = vld [vmem:[%s5372_s9 + $0xac] sm:$0xf]  ;;  %v3972_v27 = vld [vmem:[%s5372_s9 + $0xb0] sm:$0x1]  ;;  %v4974_v3 = vld [vmem:[#allocation6 + $0x178] sm:$0xff]   ;;  %p5068_p12 = por %p5067_p11, %p5066_p10 }
  0x81   : > { %4407 = vmatpush3.bf16.msra.mxu1 %v4949_v35  ;;  %v1753_v35 = vor.u32 %v1752_v30, %v1748_v29  ;;  %v3978_v39 = vcombine.low %v1725_v32, %v1735_v34  ;;  %v1818_v30 = vshll.u32 %v3971_v25, 16  ;;  %v1822_v32 = vshrl.u32 %v3971_v25, 16  ;;  %v4970_v34 = vld [vmem:[%s5372_s9 + $0x54] sm:$0xff]  }
  0x82   : > { %4535 = vmatpush3.bf16.msra.mxu0 %v4950_v44  ;;  %4424 = vmatprep.subr.bf16.mxu1 %v4953_v51  ;;  %v1744_v40 = vrot.slane %v1743_v33, 4  ;;  %v3965_v44 = vld [vmem:[%s5372_s9 + $0x94] sm:$0xf]  ;;  %v1791_v19 = vor.u32 %v1790_v12, %v1787_v11  ;;  %v1828_v33 = vshll.u32 %v3972_v27, 16  ;;  %v5462_v27 = vld [vmem:[#allocation6 + $0x80] sm:$0xff]   ;;  %p5069_p0 = pnand %p5068_p12, %p5062_p7 }
  0x83   : > { %4552 = vmatprep.subr.bf16.mxu0 %v4954_v56  ;;  %v1754_v45 = vrot.slane %v1753_v35, 4  ;;  %v1770_v49 = vshll.u32 %v3965_v44, 16 }
  0x84   : > { %4409 = vmatmul.mubr.bf16.vlgmr.msra.gmra.mrb[0].mxu1 %v4952_v54  ;;  %v1749_v50 = vsel %vm5391_vm2, %v1744_v40, %v1748_v29  ;;  %v1763_v54 = vrot.slane %v1761_v47, 4  ;;  %v1792_v26 = vrot.slane %v1791_v19, 4  ;;  %v4971_v40 = vld [vmem:[#allocation6 + $0x70] sm:$0xff]   ;;  %v1830_v43 = vrot.slane %v1828_v33, 5  ;;  %v3974_v47 = vld [vmem:[%s5372_s9 + $0xb8] sm:$0xf] }
  0x85   : > { %4537 = vmatmul.mubr.bf16.vlgmr.msra.gmra.mrb[0].mxu0 %v3977_v10  ;;  %4425 = vmatpush3.bf16.msra.mxu1 %v4953_v51  ;;  %v1774_v51 = vshrl.u32 %v3965_v44, 16  ;;  %v1759_v53 = vsel %vm5391_vm2, %v1754_v45, %v1758_v37  ;;  %v1842_v52 = vshll.u32 %v3974_v47, 16  ;;  %v3993_v19 = vld [vmem:[%s5372_s9 + $0x64] sm:$0xf]  ;;  %v559_v33 = vld [vmem:[%s5372_s9 + $0x10] sm:$0xf] }
  0x86   : > { %4553 = vmatpush3.bf16.msra.mxu0 %v4954_v56  ;;  %4426 = vmatprep.subr.bf16.mxu1 %v4955_v1  ;;  %v1772_v56 = vrot.slane %v1770_v49, 5  ;;  %v3979_v57 = vcombine.low %v1749_v50, %v1759_v53  ;;  %v1767_v61 = vor.u32 %v1766_v55, %v1763_v54  ;;  %v1797_v35 = vsel %vm5391_vm2, %v1792_v26, %v1796_v13  ;;  %v4972_v53 = vld [vmem:[#allocation6 + $0x170] sm:$0xff]   ;;  %v3994_v26 = vld [vmem:[%s5372_s9 + $0x68] sm:$0x1] }
  0x87   : > { %4554 = vmatprep.subr.bf16.mxu0 %v4956_v5  ;;  %4412 = vmatprep.mubr.bf16.mxu1 %v4957_v6  ;;  %v1776_v58 = vrot.slane %v1774_v51, 4  ;;  %v1833_v50 = vshrl.u32 %v3973_v46, 16  ;;  %v1836_v51 = vshll.u32 %v3973_v46, 16  ;;  %v1846_v55 = vshrl.u32 %v3974_v47, 16 }
  0x88   : > { %4540 = vmatprep.mubr.bf16.mxu0 %v3978_v39  ;;  %v1768_v6 = vrot.slane %v1767_v61, 4  ;;  %v1820_v39 = vrot.slane %v1818_v30, 5  ;;  %v1844_v61 = vrot.slane %v1842_v52, 5  ;;  %v2148_v30 = vrot.slane %v3993_v19, 5 }
  0x89   : > { %4427 = vmatpush3.bf16.msra.mxu1 %v4955_v1  ;;  %v1777_v1 = vor.u32 %v1776_v58, %v1772_v56  ;;  %v1848_v63 = vrot.slane %v1846_v55, 4  ;;  %v3997_v55 = vld [vmem:[%s5372_s9 + $0x74] sm:$0x1] }
  0x8a   : > { %4555 = vmatpush3.bf16.msra.mxu0 %v4956_v5  ;;  %4428 = vmatprep.subr.bf16.mxu1 %v4959_v24  ;;  %v4966_v5 = vld [vmem:[#allocation6 + $0x160] sm:$0xff]   ;;  %v1773_v15 = vsel %vm5391_vm2, %v1768_v6, %v1772_v56  ;;  %v1852_v56 = vshll.u32 %v3975_v48, 16  ;;  %v620_v48 = vshrl.u32 %v559_v33, 16 }
  0x8b   : > { %4556 = vmatprep.subr.bf16.mxu0 %v4960_v31  ;;  %v1778_v10 = vrot.slane %v1777_v1, 4  ;;  %v1849_v6 = vor.u32 %v1848_v63, %v1844_v61 }
  0x8c   : > { %4413 = vmatmul.mubr.bf16.gmra.mrb[4].mxu1 %v4958_v28  ;;  %v1854_v2 = vrot.slane %v1852_v56, 5 }
  0x8d   : > { %4429 = vmatpush3.bf16.msra.mxu1 %v4959_v24  ;;  %4416 = vmatprep.mubr.bf16.mxu1 %v4963_v42  ;;  %v1783_v18 = vsel %vm5391_vm2, %v1778_v10, %v1782_v59  ;;  %v3970_v24 = vld [vmem:[%s5372_s9 + $0xa8] sm:$0xf]  ;;  %v1824_v42 = vrot.slane %v1822_v32, 4  ;;  %v1835_v59 = vrot.slane %v1833_v50, 4  ;;  %v586_v10 = vshll.u32 %v555_v4, 16 }
  0x8e   : > { %4557 = vmatpush3.bf16.msra.mxu0 %v4960_v31  ;;  %4430 = vmatprep.subr.bf16.mxu1 %v4961_v38  ;;  %v3980_v20 = vcombine.low %v1773_v15, %v1783_v18  ;;  %v1809_v28 = vshrl.u32 %v3970_v24, 16  ;;  %v1812_v29 = vshll.u32 %v3970_v24, 16  ;;  %v1802_v31 = vrot.slane %v1801_v21, 4  ;;  %v3992_v15 = vld [vmem:[%s5372_s9 + $0x60] sm:$0xe] }
  0x8f   : > { %4541 = vmatmul.mubr.bf16.gmra.mrb[4].mxu0 %v3979_v57  ;;  %4558 = vmatprep.subr.bf16.mxu0 %v4962_v41  ;;  %v1825_v49 = vor.u32 %v1824_v42, %v1820_v39  ;;  %v4973_v57 = vld [vmem:[#allocation6 + $0x78] sm:$0xff]   ;;  %v1850_v16 = vrot.slane %v1849_v6, 4  ;;  %v588_v18 = vrot.slane %v586_v10, 5  ;;  %v558_v32 = vld [vmem:[%s5372_s9 + $0xc] sm:$0xf]  ;;  %v2150_v42 = vrot.slane %v2148_v30, 4 }
  0x90   : > { %4544 = vmatprep.mubr.bf16.mxu0 %v3980_v20  ;;  %v1811_v37 = vrot.slane %v1809_v28, 4  ;;  %v4016_v20 = vrot.slane %v3992_v15, 9 }
  0x91   : > { %4431 = vmatpush3.bf16.msra.mxu1 %v4961_v38  ;;  %v1814_v38 = vrot.slane %v1812_v29, 5  ;;  %v1826_v58 = vrot.slane %v1825_v49, 4  ;;  %v1855_v28 = vsel %vm5391_vm2, %v1850_v16, %v1854_v2  ;;  %v3995_v49 = vld [vmem:[%s5372_s9 + $0x6c] sm:$0xe]  ;;  %v2158_v2 = vrot.slane %v3997_v55, 5 }
  0x92   : > { %4559 = vmatpush3.bf16.msra.mxu0 %v4962_v41  ;;  %4432 = vmatprep.subr.bf16.mxu1 %v4965_v60  ;;  %v1807_v41 = vsel %vm5391_vm2, %v1802_v31, %v1806_v22  ;;  %v2151_v31 = vrot.slane %v3994_v26, 5  ;;  %v3998_v16 = vld [vmem:[%s5372_s9 + $0x78] sm:$0xe] }
  0x93   : > { %4560 = vmatprep.subr.bf16.mxu0 %v4966_v5  ;;  %v3981_v44 = vcombine.low %v1797_v35, %v1807_v41  ;;  %v1815_v45 = vor.u32 %v1814_v38, %v1811_v37  ;;  %v1831_v0 = vsel %vm5391_vm2, %v1826_v58, %v1830_v43  ;;  %v560_v37 = vld [vmem:[%s5372_s9 + $0x14] sm:$0x1]  ;;  %v607_v38 = vshrl.u32 %v558_v32, 16 }
  0x94   : > { %4417 = vmatmul.mubr.bf16.gmra.mrb[8].mxu1 %v4964_v7  ;;  %v556_v7 = vld [vmem:[%s5372_s9 + $0x4] sm:$0xf]  ;;  %v2149_v41 = vsel %vm5457_vm5, %v4016_v20, %v2148_v30  ;;  %v616_v43 = vshll.u32 %v559_v33, 16 }
  0x95   : > { %4433 = vmatpush3.bf16.msra.mxu1 %v4965_v60  ;;  %4420 = vmatprep.mubr.bf16.mxu1 %v4969_v23  ;;  %v1816_v54 = vrot.slane %v1815_v45, 4  ;;  %v1838_v60 = vrot.slane %v1836_v51, 5  ;;  %v592_v12 = vshll.u32 %v556_v7, 16  ;;  %v596_v13 = vshrl.u32 %v556_v7, 16  ;;  %v564_v30 = vld [vmem:[%s5372_s9 + $0x24] sm:$0xf] }
  0x96   : > { %4561 = vmatpush3.bf16.msra.mxu0 %v4966_v5  ;;  %4434 = vmatprep.subr.bf16.mxu1 %v4967_v14  ;;  %v609_v46 = vrot.slane %v607_v38, 4  ;;  %v2152_v51 = vsel %vm5457_vm5, %v2150_v42, %v2151_v31  ;;  %v618_v52 = vrot.slane %v616_v43, 5  ;;  %v4979_v42 = vld [vmem:[#allocation6 + $0x90] sm:$0xff]  }
  0x97   : > { %4562 = vmatprep.subr.bf16.mxu0 %v4968_v17  ;;  %4545 = vmatmul.mubr.bf16.gmra.mrb[8].mxu0 %v3981_v44  ;;  %v1821_v62 = vsel %vm5391_vm2, %v1816_v54, %v1820_v39  ;;  %v1839_v1 = vor.u32 %v1838_v60, %v1835_v59  ;;  %v594_v22 = vrot.slane %v592_v12, 5  ;;  %v598_v23 = vrot.slane %v596_v13, 4  ;;  %v4976_v44 = vld [vmem:[#allocation6 + $0x180] sm:$0xff]   ;;  %v3996_v54 = vld [vmem:[%s5372_s9 + $0x70] sm:$0xf]  ;;  %v4978_v12 = vld [vmem:[#allocation6 + $0x188] sm:$0xff]  }
  0x98   : > { %v3982_v5 = vcombine.low %v1821_v62, %v1831_v0  ;;  %v610_v39 = vshll.u32 %v558_v32, 16  ;;  %v622_v59 = vrot.slane %v620_v48, 4  ;;  %v4017_v62 = vrot.slane %v3995_v49, 9  ;;  %v4980_v48 = vld [vmem:[#allocation6 + $0x190] sm:$0xff]  }
  0x99   : > { %4435 = vmatpush3.bf16.msra.mxu1 %v4967_v14  ;;  %v1840_v11 = vrot.slane %v1839_v1, 4  ;;  %v602_v14 = vshll.u32 %v557_v8, 16  ;;  %v599_v35 = vor.u32 %v598_v23, %v594_v22  ;;  %v2155_v63 = vrot.slane %v3996_v54, 5  ;;  %v562_v8 = vld [vmem:[%s5372_s9 + $0x1c] sm:$0xf] }
  0x9a   : > { %4563 = vmatpush3.bf16.msra.mxu0 %v4968_v17  ;;  %4436 = vmatprep.subr.bf16.mxu1 %v4971_v40  ;;  %v585_v17 = vrot.slane %v583_v9, 4  ;;  %v612_v47 = vrot.slane %v610_v39, 5  ;;  %v623_v1 = vor.u32 %v622_v59, %v618_v52  ;;  %v563_v9 = vld [vmem:[%s5372_s9 + $0x20] sm:$0x1]  ;;  %v644_v15 = vshrl.u32 %v562_v8, 16 }
  0x9b   : > { %4564 = vmatprep.subr.bf16.mxu0 %v4972_v53  ;;  %4548 = vmatprep.mubr.bf16.mxu0 %v3982_v5  ;;  %v1845_v21 = vsel %vm5391_vm2, %v1840_v11, %v1844_v61  ;;  %v604_v24 = vrot.slane %v602_v14, 5  ;;  %v600_v45 = vrot.slane %v599_v35, 4  ;;  %v2157_v4 = vrot.slane %v2155_v63, 4  ;;  %v561_v5 = vld [vmem:[%s5372_s9 + $0x18] sm:$0xf] }
  0x9c   : > { %4421 = vmatmul.mubr.bf16.gmra.mrb[12].mxu1 %v4970_v34  ;;  %v589_v29 = vor.u32 %v588_v18, %v585_v17  ;;  %v3983_v34 = vcombine.low %v1845_v21, %v1855_v28  ;;  %v613_v58 = vor.u32 %v612_v47, %v609_v46  ;;  %v624_v7 = vrot.slane %v623_v1, 4  ;;  %v3999_v21 = vld [vmem:[%s5372_s9 + $0x7c] sm:$0xf]  ;;  %v565_v35 = vld [vmem:[%s5372_s9 + $0x28] sm:$0xf] }
  0x9d   : > { %4437 = vmatpush3.bf16.msra.mxu1 %v4971_v40  ;;  %v605_v56 = vsel %vm5391_vm2, %v600_v45, %v604_v24  ;;  %v631_v10 = vshrl.u32 %v561_v5, 16  ;;  %v2159_v11 = vsel %vm5457_vm5, %v2157_v4, %v2158_v2  ;;  %v634_v13 = vshll.u32 %v561_v5, 16  ;;  %v4977_v24 = vld [vmem:[#allocation6 + $0x88] sm:$0xff]  }
  0x9e   : > { %4565 = vmatpush3.bf16.msra.mxu0 %v4972_v53  ;;  %4438 = vmatprep.subr.bf16.mxu1 %v4973_v57  ;;  %v590_v40 = vrot.slane %v589_v29, 4  ;;  %v626_v53 = vshll.u32 %v560_v37, 16  ;;  %v614_v0 = vrot.slane %v613_v58, 4  ;;  %v640_v14 = vshll.u32 %v562_v8, 16  ;;  %v566_v39 = vld [vmem:[%s5372_s9 + $0x2c] sm:$0x1] }
  0x9f   : > { %4566 = vmatprep.subr.bf16.mxu0 %v4974_v3  ;;  %4549 = vmatmul.mubr.bf16.gmra.mrb[12].mxu0 %v3983_v34  ;;  %v633_v19 = vrot.slane %v631_v10, 4  ;;  %v650_v20 = vshll.u32 %v563_v9, 16  ;;  %v636_v26 = vrot.slane %v634_v13, 5  ;;  %v646_v29 = vrot.slane %v644_v15, 4  ;;  %v567_v8 = vld [vmem:[%s5372_s9 + $0x30] sm:$0xf] }
  0xa0   : > { %v595_v50 = vsel %vm5391_vm2, %v590_v40, %v594_v22  ;;  %v628_v61 = vrot.slane %v626_v53, 5  ;;  %v619_v6 = vsel %vm5391_vm2, %v614_v0, %v618_v52  ;;  %v4000_v22 = vld [vmem:[%s5372_s9 + $0x80] sm:$0x1]  ;;  %v642_v28 = vrot.slane %v640_v14, 5  ;;  %v4001_v52 = vld [vmem:[%s5372_s9 + $0x84] sm:$0xe] }
  0xa1   : > { %4439 = vmatpush3.bf16.msra.mxu1 %v4973_v57  ;;  %v4024_v57 = vcombine.low %v2149_v41, %v2152_v51  ;;  %v3880_v60 = vcombine.low %v595_v50, %v605_v56  ;;  %v652_v31 = vrot.slane %v650_v20, 5  ;;  %v4018_v32 = vrot.slane %v3998_v16, 9  ;;  %v4002_v56 = vld [vmem:[%s5372_s9 + $0x88] sm:$0xf]  ;;  %v569_v13 = vld [vmem:[%s5372_s9 + $0x38] sm:$0x1] }
  0xa2   : > { %4567 = vmatpush3.bf16.msra.mxu0 %v4974_v3  ;;  %4456 = vmatprep.subr.bf16.mxu1 %v5462_v27  ;;  %v2156_v3 = vsel %vm5457_vm5, %v4017_v62, %v2155_v63  ;;  %v629_v17 = vsel %vm5391_vm2, %v624_v7, %v628_v61  ;;  %v2162_v33 = vrot.slane %v3999_v21, 5  ;;  %v2165_v34 = vrot.slane %v4000_v22, 5  ;;  %v4003_v62 = vld [vmem:[%s5372_s9 + $0x8c] sm:$0x1]  ;;  %v4983_v15 = vld [vmem:[#allocation6 + $0xa0] sm:$0xff]  }
  0xa3   : > { %4584 = vmatprep.subr.bf16.mxu0 %v4976_v44  ;;  %4568 = vmatprep.mubr.bf16.mxu0 %v4024_v57  ;;  %v4025_v18 = vcombine.low %v2156_v3, %v2159_v11  ;;  %v3881_v23 = vcombine.low %v619_v6, %v629_v17  ;;  %v637_v37 = vor.u32 %v636_v26, %v633_v19  ;;  %v655_v40 = vshrl.u32 %v564_v30, 16  ;;  %v4982_v57 = vld [vmem:[#allocation6 + $0x198] sm:$0xff]   ;;  %v4004_v20 = vld [vmem:[%s5372_s9 + $0x90] sm:$0xe]  ;;  %v4984_v21 = vld [vmem:[#allocation6 + $0x1a0] sm:$0xff]  }
  0xa4   : > { %4440 = vmatprep.mubr.bf16.mxu1 %v3880_v60  ;;  %v647_v38 = vor.u32 %v646_v29, %v642_v28  ;;  %v658_v41 = vshll.u32 %v564_v30, 16  ;;  %v2163_v43 = vsel %vm5457_vm5, %v4018_v32, %v2162_v33  ;;  %v2164_v45 = vrot.slane %v2162_v33, 4  ;;  %v4981_v6 = vld [vmem:[#allocation6 + $0x98] sm:$0xff]  }
  0xa5   : > { %4441 = vmatmul.mubr.bf16.vlgmr.msra.gmra.mrb[0].mxu1 %v3881_v23  ;;  %v664_v46 = vshll.u32 %v565_v35, 16  ;;  %v668_v47 = vshrl.u32 %v565_v35, 16  ;;  %v657_v50 = vrot.slane %v655_v40, 4  ;;  %v674_v55 = vshll.u32 %v566_v39, 16  ;;  %v4006_v29 = vld [vmem:[%s5372_s9 + $0x98] sm:$0x1] }
  0xa6   : > { %4457 = vmatpush3.bf16.msra.mxu1 %v5462_v27  ;;  %v648_v49 = vrot.slane %v647_v38, 4  ;;  %v660_v51 = vrot.slane %v658_v41, 5  ;;  %v2166_v53 = vsel %vm5457_vm5, %v2164_v45, %v2165_v34  ;;  %v4019_v2 = vrot.slane %v4001_v52, 9  ;;  %v570_v34 = vld [vmem:[%s5372_s9 + $0x3c] sm:$0xf]  ;;  %v4985_v41 = vld [vmem:[#allocation6 + $0xa8] sm:$0xff]  }
  0xa7   : > { %4569 = vmatmul.mubr.bf16.vlgmr.msra.gmra.mrb[0].mxu0 %v4025_v18  ;;  %4458 = vmatprep.subr.bf16.mxu1 %v4977_v24  ;;  %v666_v27 = vrot.slane %v664_v46, 5  ;;  %v670_v54 = vrot.slane %v668_v47, 4  ;;  %v4026_v60 = vcombine.low %v2163_v43, %v2166_v53  ;;  %v676_v1 = vrot.slane %v674_v55, 5  ;;  %v571_v40 = vld [vmem:[%s5372_s9 + $0x40] sm:$0xf] }
  0xa8   : > { %4585 = vmatpush3.bf16.msra.mxu0 %v4976_v44  ;;  %v638_v44 = vrot.slane %v637_v37, 4  ;;  %v653_v59 = vsel %vm5391_vm2, %v648_v49, %v652_v31  ;;  %v661_v61 = vor.u32 %v660_v51, %v657_v50  ;;  %v2169_v4 = vrot.slane %v4002_v56, 5  ;;  %v572_v45 = vld [vmem:[%s5372_s9 + $0x44] sm:$0x1]  ;;  %v4986_v51 = vld [vmem:[#allocation6 + $0x1a8] sm:$0xff]  }
  0xa9   : > { %4586 = vmatprep.subr.bf16.mxu0 %v4978_v12  ;;  %v671_v0 = vor.u32 %v670_v54, %v666_v27  ;;  %4572 = vmatprep.mubr.bf16.mxu0 %v4026_v60  ;;  %v2172_v5 = vrot.slane %v4003_v62, 5  ;;  %v679_v14 = vshrl.u32 %v567_v8, 16  ;;  %v682_v17 = vshll.u32 %v567_v8, 16  ;;  %v4007_v55 = vld [vmem:[%s5372_s9 + $0x9c] sm:$0xe]  ;;  %v4988_v62 = vld [vmem:[#allocation6 + $0x1b0] sm:$0xff]  }
  0xaa   : > { %v643_v58 = vsel %vm5391_vm2, %v638_v44, %v642_v28  ;;  %4459 = vmatpush3.bf16.msra.mxu1 %v4977_v24  ;;  %v662_v3 = vrot.slane %v661_v61, 4  ;;  %v2170_v10 = vsel %vm5457_vm5, %v4019_v2, %v2169_v4  ;;  %v2171_v11 = vrot.slane %v2169_v4, 4  ;;  %v4005_v28 = vld [vmem:[%s5372_s9 + $0x94] sm:$0xf]  ;;  %v4008_v60 = vld [vmem:[%s5372_s9 + $0xa0] sm:$0xf] }
  0xab   : > { %v3882_v63 = vcombine.low %v643_v58, %v653_v59  ;;  %4460 = vmatprep.subr.bf16.mxu1 %v4979_v42  ;;  %v672_v7 = vrot.slane %v671_v0, 4  ;;  %v681_v24 = vrot.slane %v679_v14, 4  ;;  %v698_v26 = vshll.u32 %v569_v13, 16  ;;  %v5533_v61 = vld [vmem:[#allocation6 + $0xb0] sm:$0xff]   ;;  %v4990_v13 = vld [vmem:[#allocation6 + $0x1b8] sm:$0xff]  }
  0xac   : > { %4587 = vmatpush3.bf16.msra.mxu0 %v4978_v12  ;;  %v667_v9 = vsel %vm5391_vm2, %v662_v3, %v666_v27  ;;  %v568_v12 = vld [vmem:[%s5372_s9 + $0x34] sm:$0xf]  ;;  %v2173_v23 = vsel %vm5457_vm5, %v2171_v11, %v2172_v5  ;;  %v684_v31 = vrot.slane %v682_v17, 5  ;;  %v4020_v37 = vrot.slane %v4004_v20, 9  ;;  %v4009_v3 = vld [vmem:[%s5372_s9 + $0xa4] sm:$0x1] }
  0xad   : > { %4588 = vmatprep.subr.bf16.mxu0 %v4980_v48  ;;  %4444 = vmatprep.mubr.bf16.mxu1 %v3882_v63  ;;  %v677_v16 = vsel %vm5391_vm2, %v672_v7, %v676_v1  ;;  %v688_v18 = vshll.u32 %v568_v12, 16  ;;  %v692_v19 = vshrl.u32 %v568_v12, 16  ;;  %v4027_v30 = vcombine.low %v2170_v10, %v2173_v23  ;;  %v573_v12 = vld [vmem:[%s5372_s9 + $0x48] sm:$0xf]  ;;  %v574_v17 = vld [vmem:[%s5372_s9 + $0x4c] sm:$0xf] }
  0xae   : > { %4461 = vmatpush3.bf16.msra.mxu1 %v4979_v42  ;;  %v3883_v22 = vcombine.low %v667_v9, %v677_v16  ;;  %v700_v35 = vrot.slane %v698_v26, 5  ;;  %v2176_v38 = vrot.slane %v4005_v28, 5  ;;  %v2179_v39 = vrot.slane %v4006_v29, 5  ;;  %v4989_v26 = vld [vmem:[#allocation6 + $0xb8] sm:$0xff]  }
  0xaf   : > { %4462 = vmatprep.subr.bf16.mxu1 %v4981_v6  ;;  %v690_v32 = vrot.slane %v688_v18, 5  ;;  %v694_v33 = vrot.slane %v692_v19, 4  ;;  %4573 = vmatmul.mubr.bf16.gmra.mrb[4].mxu0 %v4027_v30  ;;  %v685_v42 = vor.u32 %v684_v31, %v681_v24  ;;  %v703_v46 = vshrl.u32 %v570_v34, 16  ;;  %v575_v18 = vld [vmem:[%s5372_s9 + $0x50] sm:$0x1] }
  0xb0   : > { %4589 = vmatpush3.bf16.msra.mxu0 %v4980_v48  ;;  %4445 = vmatmul.mubr.bf16.gmra.mrb[4].mxu1 %v3883_v22  ;;  %v706_v47 = vshll.u32 %v570_v34, 16  ;;  %v2177_v48 = vsel %vm5457_vm5, %v4020_v37, %v2176_v38  ;;  %v2178_v44 = vrot.slane %v2176_v38, 4  ;;  %v712_v49 = vshll.u32 %v571_v40, 16  ;;  %v4010_v24 = vld [vmem:[%s5372_s9 + $0xa8] sm:$0xe] }
  0xb1   : > { %4590 = vmatprep.subr.bf16.mxu0 %v4982_v57  ;;  %v695_v43 = vor.u32 %v694_v33, %v690_v32  ;;  %v716_v50 = vshrl.u32 %v571_v40, 16  ;;  %v686_v52 = vrot.slane %v685_v42, 4  ;;  %v705_v27 = vrot.slane %v703_v46, 4  ;;  %v4012_v33 = vld [vmem:[%s5372_s9 + $0xb0] sm:$0x1]  ;;  %v5557_v46 = vld [vmem:[#allocation6 + $0xc0] sm:$0xff]  }
  0xb2   : > { %4463 = vmatpush3.bf16.msra.mxu1 %v4981_v6  ;;  %v708_v54 = vrot.slane %v706_v47, 5  ;;  %v2180_v56 = vsel %vm5457_vm5, %v2178_v44, %v2179_v39  ;;  %v722_v59 = vshll.u32 %v572_v45, 16  ;;  %v4021_v7 = vrot.slane %v4007_v55, 9  ;;  %v576_v39 = vld [vmem:[%s5372_s9 + $0x54] sm:$0xf] }
  0xb3   : > { %4464 = vmatprep.subr.bf16.mxu1 %v4983_v15  ;;  %v696_v53 = vrot.slane %v695_v43, 4  ;;  %v718_v58 = vrot.slane %v716_v50, 4  ;;  %v691_v63 = vsel %vm5391_vm2, %v686_v52, %v690_v32  ;;  %v4028_v1 = vcombine.low %v2177_v48, %v2180_v56  ;;  %v4011_v32 = vld [vmem:[%s5372_s9 + $0xac] sm:$0xf]  ;;  %v577_v45 = vld [vmem:[%s5372_s9 + $0x58] sm:$0xf] }
  0xb4   : > { %4591 = vmatpush3.bf16.msra.mxu0 %v4982_v57  ;;  %v714_v57 = vrot.slane %v712_v49, 5  ;;  %v709_v2 = vor.u32 %v708_v54, %v705_v27  ;;  %v724_v6 = vrot.slane %v722_v59, 5  ;;  %v2183_v9 = vrot.slane %v4008_v60, 5  ;;  %v578_v44 = vld [vmem:[%s5372_s9 + $0x5c] sm:$0x1]  ;;  %v5563_v54 = vld [vmem:[#allocation6 + $0x1c0] sm:$0xff]  }
  0xb5   : > { %4592 = vmatprep.subr.bf16.mxu0 %v4984_v21  ;;  %v701_v0 = vsel %vm5391_vm2, %v696_v53, %v700_v35  ;;  %4576 = vmatprep.mubr.bf16.mxu0 %v4028_v1  ;;  %v2186_v10 = vrot.slane %v4009_v3, 5  ;;  %v727_v19 = vshrl.u32 %v573_v12, 16  ;;  %v736_v22 = vshll.u32 %v574_v17, 16  ;;  %v4013_v59 = vld [vmem:[%s5372_s9 + $0xb4] sm:$0xe] }
  0xb6   : > { %4465 = vmatpush3.bf16.msra.mxu1 %v4983_v15  ;;  %v3884_v4 = vcombine.low %v691_v63, %v701_v0  ;;  %v719_v5 = vor.u32 %v718_v58, %v714_v57  ;;  %v710_v8 = vrot.slane %v709_v2, 4  ;;  %v2184_v15 = vsel %vm5457_vm5, %v4021_v7, %v2183_v9  ;;  %v4014_v0 = vld [vmem:[%s5372_s9 + $0xb8] sm:$0xf] }
  0xb7   : > { %4466 = vmatprep.subr.bf16.mxu1 %v4985_v41  ;;  %v2185_v16 = vrot.slane %v2183_v9, 4  ;;  %v740_v23 = vshrl.u32 %v574_v17, 16  ;;  %v729_v30 = vrot.slane %v727_v19, 4  ;;  %v746_v31 = vshll.u32 %v575_v18, 16  ;;  %v1017_v18 = vld [vmem:[%s5372_s9 + $0x4] sm:$0xf] }
  0xb8   : > { %4593 = vmatpush3.bf16.msra.mxu0 %v4984_v21  ;;  %4448 = vmatprep.mubr.bf16.mxu1 %v3884_v4  ;;  %v720_v11 = vrot.slane %v719_v5, 4  ;;  %v715_v14 = vsel %vm5391_vm2, %v710_v8, %v714_v57  ;;  %v730_v21 = vshll.u32 %v573_v12, 16  ;;  %v738_v37 = vrot.slane %v736_v22, 5  ;;  %v4015_v5 = vld [vmem:[%s5372_s9 + $0xbc] sm:$0x1] }
  0xb9   : > { %4594 = vmatprep.subr.bf16.mxu0 %v4986_v51  ;;  %v2187_v29 = vsel %vm5457_vm5, %v2185_v16, %v2186_v10  ;;  %v742_v38 = vrot.slane %v740_v23, 4  ;;  %v748_v40 = vrot.slane %v746_v31, 5  ;;  %v2190_v42 = vrot.slane %v4011_v32, 5  ;;  %v1018_v19 = vld [vmem:[%s5372_s9 + $0x8] sm:$0x1] }
  0xba   : > { %4467 = vmatpush3.bf16.msra.mxu1 %v4985_v41  ;;  %v725_v20 = vsel %vm5391_vm2, %v720_v11, %v724_v6  ;;  %v4029_v34 = vcombine.low %v2184_v15, %v2187_v29  ;;  %v732_v35 = vrot.slane %v730_v21, 5  ;;  %v4022_v41 = vrot.slane %v4010_v24, 9  ;;  %v4991_v21 = vld [vmem:[%s5372_s9 + $0xc0] sm:$0xff]   ;;  %v1019_v29 = vld [vmem:[%s5372_s9 + $0xc] sm:$0xe] }
  0xbb   : > { %4468 = vmatprep.subr.bf16.mxu1 %v5533_v61  ;;  %v3885_v28 = vcombine.low %v715_v14, %v725_v20  ;;  %v2193_v43 = vrot.slane %v4012_v33, 5  ;;  %v743_v48 = vor.u32 %v742_v38, %v738_v37  ;;  %v751_v49 = vshrl.u32 %v576_v39, 16  ;;  %v1016_v14 = vld [vmem:[%s5372_s9] sm:$0xe]  ;;  %v1021_v31 = vld [vmem:[%s5372_s9 + $0x14] sm:$0x1] }
  0xbc   : > { %4595 = vmatpush3.bf16.msra.mxu0 %v4986_v51  ;;  %v733_v47 = vor.u32 %v732_v35, %v729_v30  ;;  %v754_v50 = vshll.u32 %v576_v39, 16  ;;  %v2191_v51 = vsel %vm5457_vm5, %v4022_v41, %v2190_v42  ;;  %v2192_v52 = vrot.slane %v2190_v42, 4  ;;  %v1020_v30 = vld [vmem:[%s5372_s9 + $0x10] sm:$0xf] }
  0xbd   : > { %4596 = vmatprep.subr.bf16.mxu0 %v4988_v62  ;;  %4449 = vmatmul.mubr.bf16.gmra.mrb[8].mxu1 %v3885_v28  ;;  %v760_v53 = vshll.u32 %v577_v45, 16  ;;  %v764_v27 = vshrl.u32 %v577_v45, 16  ;;  %v744_v56 = vrot.slane %v743_v48, 4  ;;  %v753_v57 = vrot.slane %v751_v49, 4  ;;  %v1022_v45 = vld [vmem:[%s5372_s9 + $0x18] sm:$0xe] }
  0xbe   : > { %4577 = vmatmul.mubr.bf16.gmra.mrb[8].mxu0 %v4029_v34  ;;  %4469 = vmatpush3.bf16.msra.mxu1 %v5533_v61  ;;  %v734_v55 = vrot.slane %v733_v47, 4  ;;  %v756_v58 = vrot.slane %v754_v50, 5  ;;  %v2194_v60 = vsel %vm5457_vm5, %v2192_v52, %v2193_v43  ;;  %v770_v63 = vshll.u32 %v578_v44, 16  ;;  %v4993_v43 = vld [vmem:[%s5372_s9 + $0xcc] sm:$0xff]   ;;  %v1023_v47 = vld [vmem:[%s5372_s9 + $0x1c] sm:$0xf] }
  0xbf   : > { %4470 = vmatprep.subr.bf16.mxu1 %v4989_v26  ;;  %v762_v61 = vrot.slane %v760_v53, 5  ;;  %v749_v2 = vsel %vm5391_vm2, %v744_v56, %v748_v40  ;;  %v4030_v3 = vcombine.low %v2191_v51, %v2194_v60  ;;  %v4023_v9 = vrot.slane %v4013_v59, 9  ;;  %v4995_v44 = vld [vmem:[#allocation6 + $0xc8] sm:$0xff]   ;;  %v1024_v49 = vld [vmem:[%s5372_s9 + $0x20] sm:$0x1] }
  0xc0   : > { %4597 = vmatpush3.bf16.msra.mxu0 %v4988_v62  ;;  %v766_v62 = vrot.slane %v764_v27, 4  ;;  %v739_v1 = vsel %vm5391_vm2, %v734_v55, %v738_v37  ;;  %v757_v4 = vor.u32 %v756_v58, %v753_v57  ;;  %v772_v8 = vrot.slane %v770_v63, 5  ;;  %v4996_v53 = vld [vmem:[#allocation6 + $0x1c8] sm:$0xff]   ;;  %v1025_v55 = vld [vmem:[%s5372_s9 + $0x24] sm:$0xe]  ;;  %v4997_v58 = vld [vmem:[%s5372_s9 + $0xd8] sm:$0xff]  }
  0xc1   : > { %4598 = vmatprep.subr.bf16.mxu0 %v4990_v13  ;;  %v3886_v6 = vcombine.low %v739_v1, %v749_v2  ;;  %4580 = vmatprep.mubr.bf16.mxu0 %v4030_v3  ;;  %v2197_v11 = vrot.slane %v4014_v0, 5  ;;  %v2200_v12 = vrot.slane %v4015_v5, 5  ;;  %v3896_v20 = vrot.slane %v1016_v14, 9  ;;  %v1026_v59 = vld [vmem:[%s5372_s9 + $0x28] sm:$0xf] }
  0xc2   : > { %4471 = vmatpush3.bf16.msra.mxu1 %v4989_v26  ;;  %v767_v7 = vor.u32 %v766_v62, %v762_v61  ;;  %v758_v10 = vrot.slane %v757_v4, 4  ;;  %v1069_v23 = vrot.slane %v1017_v18, 5  ;;  %v1072_v24 = vrot.slane %v1018_v19, 5  ;;  %v1027_v60 = vld [vmem:[%s5372_s9 + $0x2c] sm:$0x1]  ;;  %v4998_v4 = vld [vmem:[#allocation6 + $0xd0] sm:$0xff]  }
  0xc3   : > { %4488 = vmatprep.subr.bf16.mxu1 %v5557_v46  ;;  %4452 = vmatprep.mubr.bf16.mxu1 %v3886_v6  ;;  %v2198_v16 = vsel %vm5457_vm5, %v4023_v9, %v2197_v11  ;;  %v2199_v17 = vrot.slane %v2197_v11, 4  ;;  %v3897_v35 = vrot.slane %v1019_v29, 9  ;;  %v1076_v37 = vrot.slane %v1020_v30, 5  ;;  %v4999_v6 = vld [vmem:[%s5372_s9 + $0xe4] sm:$0xff]   ;;  %v5001_v9 = vld [vmem:[#allocation6 + $0xd8] sm:$0xff]  }
  0xc4   : > { %4599 = vmatpush3.bf16.msra.mxu0 %v4990_v13  ;;  %v768_v13 = vrot.slane %v767_v7, 4  ;;  %v763_v15 = vsel %vm5391_vm2, %v758_v10, %v762_v61  ;;  %v1070_v33 = vsel %vm5457_vm5, %v3896_v20, %v1069_v23  ;;  %v1071_v34 = vrot.slane %v1069_v23, 4  ;;  %v1028_v7 = vld [vmem:[%s5372_s9 + $0x30] sm:$0xe]  ;;  %v1029_v10 = vld [vmem:[%s5372_s9 + $0x34] sm:$0xf] }
  0xc5   : > { %4616 = vmatprep.subr.bf16.mxu0 %v5563_v54  ;;  %v2201_v28 = vsel %vm5457_vm5, %v2199_v17, %v2200_v12  ;;  %v1079_v38 = vrot.slane %v1021_v31, 5  ;;  %v1077_v41 = vsel %vm5457_vm5, %v3897_v35, %v1076_v37  ;;  %v1078_v42 = vrot.slane %v1076_v37, 4  ;;  %v1030_v11 = vld [vmem:[%s5372_s9 + $0x38] sm:$0x1]  ;;  %v1033_v17 = vld [vmem:[%s5372_s9 + $0x44] sm:$0x1] }
  0xc6   : > { %v773_v22 = vsel %vm5391_vm2, %v768_v13, %v772_v8  ;;  %v4031_v32 = vcombine.low %v2198_v16, %v2201_v28  ;;  %v1073_v39 = vsel %vm5457_vm5, %v1071_v34, %v1072_v24  ;;  %v3898_v50 = vrot.slane %v1022_v45, 9  ;;  %v5002_v12 = vld [vmem:[#allocation6 + $0x1d8] sm:$0xff]   ;;  %v1032_v16 = vld [vmem:[%s5372_s9 + $0x40] sm:$0xf]  ;;  %v5003_v20 = vld [vmem:[%s5372_s9 + $0xf0] sm:$0xff]  }
  0xc7   : > { %v3887_v26 = vcombine.low %v763_v15, %v773_v22  ;;  %v3904_v40 = vcombine.low %v1070_v33, %v1073_v39  ;;  %v1080_v48 = vsel %vm5457_vm5, %v1078_v42, %v1079_v38  ;;  %v1083_v51 = vrot.slane %v1023_v47, 5  ;;  %v1031_v15 = vld [vmem:[%s5372_s9 + $0x3c] sm:$0xe]  ;;  %v5004_v29 = vld [vmem:[#allocation6 + $0xe0] sm:$0xff]   ;;  %v5007_v35 = vld [vmem:[#allocation6 + $0xe8] sm:$0xff]  }
  0xc8   : > { %4581 = vmatmul.mubr.bf16.gmra.mrb[12].mxu0 %v4031_v32  ;;  %v3905_v52 = vcombine.low %v1077_v41, %v1080_v48  ;;  %v1086_v27 = vrot.slane %v1024_v49, 5  ;;  %v3899_v61 = vrot.slane %v1025_v55, 9  ;;  %v1090_v62 = vrot.slane %v1026_v59, 5  ;;  %v5005_v32 = vld [vmem:[%s5372_s9 + $0xfc] sm:$0xff]   ;;  %v1034_v37 = vld [vmem:[%s5372_s9 + $0x48] sm:$0xe] }
  0xc9   : > { %4453 = vmatmul.mubr.bf16.gmra.mrb[12].mxu1 %v3887_v26  ;;  %4600 = vmatprep.mubr.bf16.mxu0 %v4991_v21  ;;  %v1084_v56 = vsel %vm5457_vm5, %v3898_v50, %v1083_v51  ;;  %v1085_v57 = vrot.slane %v1083_v51, 4  ;;  %v1093_v63 = vrot.slane %v1027_v60, 5  ;;  %v1097_v13 = vrot.slane %v1029_v10, 5  ;;  %v5006_v33 = vld [vmem:[#allocation6 + $0x1e0] sm:$0xff]   ;;  %v1035_v38 = vld [vmem:[%s5372_s9 + $0x4c] sm:$0xf] }
  0xca   : > { %4472 = vmatprep.mubr.bf16.mxu1 %v3904_v40  ;;  %v1091_v2 = vsel %vm5457_vm5, %v3899_v61, %v1090_v62  ;;  %v1092_v3 = vrot.slane %v1090_v62, 4  ;;  %v1100_v14 = vrot.slane %v1030_v11, 5  ;;  %v3901_v21 = vrot.slane %v1031_v15, 9  ;;  %v5008_v39 = vld [vmem:[#allocation6 + $0x1e8] sm:$0xff]   ;;  %v1036_v40 = vld [vmem:[%s5372_s9 + $0x50] sm:$0x1] }
  0xcb   : > { %v1087_v0 = vsel %vm5457_vm5, %v1085_v57, %v1086_v27  ;;  %v1099_v19 = vrot.slane %v1097_v13, 4  ;;  %v1104_v22 = vrot.slane %v1032_v16, 5  ;;  %v1107_v23 = vrot.slane %v1033_v17, 5  ;;  %v5009_v45 = vld [vmem:[%s5372_s9 + $0x108] sm:$0xff]   ;;  %v1037_v47 = vld [vmem:[%s5372_s9 + $0x54] sm:$0xe] }
  0xcc   : > { %v3906_v1 = vcombine.low %v1084_v56, %v1087_v0  ;;  %v1094_v5 = vsel %vm5457_vm5, %v1092_v3, %v1093_v63  ;;  %v3902_v41 = vrot.slane %v1034_v37, 9  ;;  %v1111_v42 = vrot.slane %v1035_v38, 5  ;;  %v1038_v49 = vld [vmem:[%s5372_s9 + $0x58] sm:$0xf]  ;;  %v1039_v50 = vld [vmem:[%s5372_s9 + $0x5c] sm:$0x1] }
  0xcd   : > { %v3907_v8 = vcombine.low %v1091_v2, %v1094_v5  ;;  %v1101_v24 = vsel %vm5457_vm5, %v1099_v19, %v1100_v14  ;;  %v1105_v26 = vsel %vm5457_vm5, %v3901_v21, %v1104_v22  ;;  %v1106_v28 = vrot.slane %v1104_v22, 4  ;;  %v5011_v59 = vld [vmem:[%s5372_s9 + $0x114] sm:$0xff]   ;;  %v4072_v2 = vld [vmem:[%s5372_s9 + $0xc0] sm:$0xf]  ;;  %v4073_v3 = vld [vmem:[%s5372_s9 + $0xc4] sm:$0xf] }
  0xce   : > { %v1112_v48 = vsel %vm5457_vm5, %v3902_v41, %v1111_v42  ;;  %v3903_v51 = vrot.slane %v1037_v47, 9  ;;  %v5012_v60 = vld [vmem:[#allocation6 + $0x1f0] sm:$0xff]   ;;  %v5013_v62 = vld [vmem:[#allocation6 + $0xf8] sm:$0xff]   ;;  %v2744_v5 = vshrl.u32 %v4072_v2, 16 }
  0xcf   : > { %v1108_v31 = vsel %vm5457_vm5, %v1106_v28, %v1107_v23  ;;  %v5014_v0 = vld [vmem:[#allocation6 + $0x1f8] sm:$0xff]   ;;  %v5016_v14 = vld [vmem:[%s5372_s9 + $0x6c] sm:$0xff]   ;;  %v4077_v16 = vld [vmem:[%s5372_s9 + $0xd4] sm:$0x1] }
  0xd0   : > { %4601 = vmatmul.mubr.bf16.vlgmr.msra.gmra.mrb[0].mxu0 %v4993_v43  ;;  %v3909_v34 = vcombine.low %v1105_v26, %v1108_v31  ;;  %v1114_v43 = vrot.slane %v1036_v40, 5  ;;  %v4076_v15 = vld [vmem:[%s5372_s9 + $0xd0] sm:$0xf]  ;;  %v5017_v26 = vld [vmem:[#allocation6 + $0x200] sm:$0xff]   ;;  %v4078_v40 = vld [vmem:[%s5372_s9 + $0xd8] sm:$0xf] }
  0xd1   : > { %4473 = vmatmul.mubr.bf16.vlgmr.msra.gmra.mrb[0].mxu1 %v3905_v52  ;;  %4617 = vmatpush3.bf16.msra.mxu0 %v5563_v54  ;;  %v3900_v54 = vrot.slane %v1028_v7, 9  ;;  %v1118_v52 = vrot.slane %v1038_v49, 5  ;;  %v2757_v7 = vshrl.u32 %v4073_v3, 16  ;;  %v2777_v21 = vshll.u32 %v4076_v15, 16  ;;  %v4079_v41 = vld [vmem:[%s5372_s9 + $0xdc] sm:$0xf] }
  0xd2   : > { %4489 = vmatpush3.bf16.msra.mxu1 %v5557_v46  ;;  %4618 = vmatprep.subr.bf16.mxu0 %v4996_v53  ;;  %v5000_v46 = vld [vmem:[#allocation6 + $0x1d0] sm:$0xff]   ;;  %v2781_v23 = vshrl.u32 %v4076_v15, 16  ;;  %v2792_v47 = vshrl.u32 %v4078_v40, 16  ;;  %v2801_v49 = vshll.u32 %v4079_v41, 16 }
  0xd3   : > { %4490 = vmatprep.subr.bf16.mxu1 %v4995_v44  ;;  %4476 = vmatprep.mubr.bf16.mxu1 %v3906_v1  ;;  %v1098_v18 = vsel %vm5457_vm5, %v3900_v54, %v1097_v13  ;;  %v1119_v56 = vsel %vm5457_vm5, %v3903_v51, %v1118_v52  ;;  %v1120_v57 = vrot.slane %v1118_v52, 4  ;;  %v5015_v1 = vld [vmem:[%s5372_s9 + $0x60] sm:$0xff]   ;;  %v2759_v54 = vrot.slane %v2757_v7, 4 }
  0xd4   : > { %4604 = vmatprep.mubr.bf16.mxu0 %v4997_v58  ;;  %v3908_v30 = vcombine.low %v1098_v18, %v1101_v24  ;;  %v5010_v58 = vld [vmem:[#allocation6 + $0xf0] sm:$0xff]   ;;  %v2787_v24 = vshll.u32 %v4077_v16, 16  ;;  %v2779_v31 = vrot.slane %v2777_v21, 5 }
  0xd5   : > { %4619 = vmatpush3.bf16.msra.mxu0 %v4996_v53  ;;  %v1121_v53 = vrot.slane %v1039_v50, 5  ;;  %v2805_v50 = vshrl.u32 %v4079_v41, 16  ;;  %v4085_v21 = vld [vmem:[%s5372_s9 + $0xf4] sm:$0xf]  ;;  %v4087_v41 = vld [vmem:[%s5372_s9 + $0xfc] sm:$0xf] }
  0xd6   : > { %4491 = vmatpush3.bf16.msra.mxu1 %v4995_v44  ;;  %4620 = vmatprep.subr.bf16.mxu0 %v5000_v46  ;;  %v1113_v44 = vrot.slane %v1111_v42, 4 }
  0xd7   : > { %4492 = vmatprep.subr.bf16.mxu1 %v4998_v4  ;;  %v1122_v61 = vsel %vm5457_vm5, %v1120_v57, %v1121_v53  ;;  %v2794_v53 = vrot.slane %v2792_v47, 4 }
  0xd8   : > { %4605 = vmatmul.mubr.bf16.gmra.mrb[4].mxu0 %v4999_v6  ;;  %v1115_v27 = vsel %vm5457_vm5, %v1113_v44, %v1114_v43  ;;  %v3911_v63 = vcombine.low %v1119_v56, %v1122_v61  ;;  %v2747_v6 = vshll.u32 %v4072_v2, 16  ;;  %v4081_v56 = vld [vmem:[%s5372_s9 + $0xe4] sm:$0xf]  ;;  %v4082_v61 = vld [vmem:[%s5372_s9 + $0xe8] sm:$0xf] }
  0xd9   : > { %4477 = vmatmul.mubr.bf16.gmra.mrb[4].mxu1 %v3907_v8  ;;  %4621 = vmatpush3.bf16.msra.mxu0 %v5000_v46  ;;  %v3910_v55 = vcombine.low %v1112_v48, %v1115_v27  ;;  %v2753_v46 = vshll.u32 %v4073_v3, 16  ;;  %v2795_v48 = vshll.u32 %v4078_v40, 16  ;;  %v2816_v2 = vshrl.u32 %v4081_v56, 16 }
  0xda   : > { %4493 = vmatpush3.bf16.msra.mxu1 %v4998_v4  ;;  %4622 = vmatprep.subr.bf16.mxu0 %v5002_v12  ;;  %v4074_v4 = vld [vmem:[%s5372_s9 + $0xc8] sm:$0x1]  ;;  %v2749_v10 = vrot.slane %v2747_v6, 5  ;;  %v2819_v3 = vshll.u32 %v4081_v56, 16  ;;  %v2825_v6 = vshll.u32 %v4082_v61, 16 }
  0xdb   : > { %4494 = vmatprep.subr.bf16.mxu1 %v5001_v9  ;;  %4608 = vmatprep.mubr.bf16.mxu0 %v5003_v20  ;;  %v2763_v8 = vshll.u32 %v4074_v4, 16  ;;  %v2755_v11 = vrot.slane %v2753_v46, 5  ;;  %v2797_v27 = vrot.slane %v2795_v48, 5  ;;  %v2829_v46 = vshrl.u32 %v4082_v61, 16  ;;  %v4089_v48 = vld [vmem:[%s5372_s9 + $0x104] sm:$0x1] }
  0xdc   : > { %4480 = vmatprep.mubr.bf16.mxu1 %v3908_v30  ;;  %v5027_v61 = vld [vmem:[%s5372_s9 + $0xa8] sm:$0xff]  }
  0xdd   : > { %4623 = vmatpush3.bf16.msra.mxu0 %v5002_v12  ;;  %v4075_v12 = vld [vmem:[%s5372_s9 + $0xcc] sm:$0xf]  ;;  %v2765_v13 = vrot.slane %v2763_v8, 5  ;;  %v2760_v19 = vor.u32 %v2759_v54, %v2755_v11  ;;  %v2818_v8 = vrot.slane %v2816_v2, 4  ;;  %v2827_v54 = vrot.slane %v2825_v6, 5 }
  0xde   : > { %4495 = vmatpush3.bf16.msra.mxu1 %v5001_v9  ;;  %4624 = vmatprep.subr.bf16.mxu0 %v5006_v33  ;;  %v2746_v9 = vrot.slane %v2744_v5, 4  ;;  %v2768_v17 = vshrl.u32 %v4075_v12, 16  ;;  %v2771_v20 = vshll.u32 %v4075_v12, 16  ;;  %v2831_v12 = vrot.slane %v2829_v46, 4  ;;  %v4092_v6 = vld [vmem:[%s5372_s9 + $0x110] sm:$0x1] }
  0xdf   : > { %4496 = vmatprep.subr.bf16.mxu1 %v5004_v29 }
  0xe0   : > { %4609 = vmatmul.mubr.bf16.gmra.mrb[8].mxu0 %v5005_v32  ;;  %v2750_v18 = vor.u32 %v2749_v10, %v2746_v9  ;;  %v2770_v22 = vrot.slane %v2768_v17, 4  ;;  %v2773_v30 = vrot.slane %v2771_v20, 5  ;;  %v2783_v32 = vrot.slane %v2781_v23, 4  ;;  %v5023_v17 = vld [vmem:[%s5372_s9 + $0x90] sm:$0xff]  }
  0xe1   : > { %4481 = vmatmul.mubr.bf16.gmra.mrb[8].mxu1 %v3909_v34  ;;  %4625 = vmatpush3.bf16.msra.mxu0 %v5006_v33  ;;  %v2789_v33 = vrot.slane %v2787_v24, 5  ;;  %v5658_v34 = vld [vmem:[#allocation6 + $0x208] sm:$0xff]   ;;  %v2821_v9 = vrot.slane %v2819_v3, 5  ;;  %v2832_v20 = vor.u32 %v2831_v12, %v2827_v54  ;;  %v5028_v12 = vld [vmem:[%s5372_s9 + $0xb4] sm:$0xff]  }
  0xe2   : > { %4497 = vmatpush3.bf16.msra.mxu1 %v5004_v29  ;;  %4626 = vmatprep.subr.bf16.mxu0 %v5008_v39  ;;  %v2751_v28 = vrot.slane %v2750_v18, 4  ;;  %v2761_v29 = vrot.slane %v2760_v19, 4  ;;  %v2784_v43 = vor.u32 %v2783_v32, %v2779_v31  ;;  %v4084_v18 = vld [vmem:[%s5372_s9 + $0xf0] sm:$0xf] }
  0xe3   : > { %4498 = vmatprep.subr.bf16.mxu1 %v5007_v35  ;;  %4612 = vmatprep.mubr.bf16.mxu0 %v5009_v45  ;;  %v4080_v45 = vld [vmem:[%s5372_s9 + $0xe0] sm:$0x1]  ;;  %v2822_v15 = vor.u32 %v2821_v9, %v2818_v8  ;;  %v2840_v23 = vshrl.u32 %v4084_v18, 16  ;;  %v2843_v24 = vshll.u32 %v4084_v18, 16  ;;  %v2833_v32 = vrot.slane %v2832_v20, 4 }
  0xe4   : > { %4484 = vmatprep.mubr.bf16.mxu1 %v3910_v55  ;;  %v2756_v37 = vsel %vm5391_vm2, %v2751_v28, %v2755_v11  ;;  %v2766_v38 = vsel %vm5391_vm2, %v2761_v29, %v2765_v13  ;;  %v2811_v51 = vshll.u32 %v4080_v45, 16  ;;  %v2785_v52 = vrot.slane %v2784_v43, 4  ;;  %v5020_v55 = vld [vmem:[%s5372_s9 + $0x84] sm:$0xff]   ;;  %v5681_v13 = vld [vmem:[#allocation6 + $0x218] sm:$0xff]   ;;  %v4093_v18 = vld [vmem:[%s5372_s9 + $0x114] sm:$0xf] }
  0xe5   : > { %4627 = vmatpush3.bf16.msra.mxu0 %v5008_v39  ;;  %v2774_v39 = vor.u32 %v2773_v30, %v2770_v22  ;;  %v4096_v42 = vcombine.low %v2756_v37, %v2766_v38  ;;  %v4086_v22 = vld [vmem:[%s5372_s9 + $0xf8] sm:$0x1]  ;;  %v2823_v28 = vrot.slane %v2822_v15, 4  ;;  %v2849_v29 = vshll.u32 %v4085_v21, 16 }
  0xe6   : > { %4499 = vmatpush3.bf16.msra.mxu1 %v5007_v35  ;;  %4628 = vmatprep.subr.bf16.mxu0 %v5012_v60  ;;  %v5019_v35 = vld [vmem:[%s5372_s9 + $0x78] sm:$0xff]   ;;  %v2853_v30 = vshrl.u32 %v4085_v21, 16  ;;  %v2859_v37 = vshll.u32 %v4086_v22, 16 }
  0xe7   : > { %4500 = vmatprep.subr.bf16.mxu1 %v5010_v58  ;;  %v2775_v44 = vrot.slane %v2774_v39, 4  ;;  %v2828_v38 = vsel %vm5391_vm2, %v2823_v28, %v2827_v54  ;;  %v2851_v39 = vrot.slane %v2849_v29, 5  ;;  %v2907_v54 = vshll.u32 %v4092_v6, 16  ;;  %v4095_v28 = vld [vmem:[%s5372_s9 + $0x11c] sm:$0x1] }
  0xe8   : > { %4613 = vmatmul.mubr.bf16.gmra.mrb[12].mxu0 %v5011_v59  ;;  %v2807_v59 = vrot.slane %v2805_v50, 4  ;;  %v2855_v40 = vrot.slane %v2853_v30, 4  ;;  %v2861_v47 = vrot.slane %v2859_v37, 5  ;;  %v2867_v50 = vshll.u32 %v4087_v41, 16 }
  0xe9   : > { %4485 = vmatmul.mubr.bf16.gmra.mrb[12].mxu1 %v3911_v63  ;;  %4629 = vmatpush3.bf16.msra.mxu0 %v5012_v60  ;;  %v2780_v57 = vsel %vm5391_vm2, %v2775_v44, %v2779_v31  ;;  %v2813_v60 = vrot.slane %v2811_v51, 5  ;;  %v2790_v63 = vsel %vm5391_vm2, %v2785_v52, %v2789_v33  ;;  %v5024_v31 = vld [vmem:[%s5372_s9 + $0x9c] sm:$0xff]   ;;  %v2842_v33 = vrot.slane %v2840_v23, 4  ;;  %v4094_v23 = vld [vmem:[%s5372_s9 + $0x118] sm:$0xf] }
  0xea   : > { %4501 = vmatpush3.bf16.msra.mxu1 %v5010_v58  ;;  %4630 = vmatprep.subr.bf16.mxu0 %v5014_v0  ;;  %v2803_v58 = vrot.slane %v2801_v49, 5  ;;  %v4097_v4 = vcombine.low %v2780_v57, %v2790_v63  ;;  %v2864_v44 = vshrl.u32 %v4087_v41, 16  ;;  %v2856_v49 = vor.u32 %v2855_v40, %v2851_v39  ;;  %v5025_v52 = vld [vmem:[#allocation6 + $0x220] sm:$0xff]  }
  0xeb   : > { %4502 = vmatprep.subr.bf16.mxu1 %v5013_v62  ;;  %4504 = vmatprep.mubr.bf16.mxu1 %v5015_v1  ;;  %v4083_v1 = vld [vmem:[%s5372_s9 + $0xec] sm:$0x1]  ;;  %v2883_v57 = vshll.u32 %v4089_v48, 16  ;;  %v2909_v22 = vrot.slane %v2907_v54, 5  ;;  %v2912_v29 = vshrl.u32 %v4093_v18, 16  ;;  %v2915_v30 = vshll.u32 %v4093_v18, 16 }
  0xec   : > { %4632 = vmatprep.mubr.bf16.mxu0 %v4096_v42  ;;  %v2808_v5 = vor.u32 %v2807_v59, %v2803_v58  ;;  %v2835_v10 = vshll.u32 %v4083_v1, 16  ;;  %v4088_v42 = vld [vmem:[%s5372_s9 + $0x100] sm:$0xf]  ;;  %v2869_v59 = vrot.slane %v2867_v50, 5  ;;  %v2931_v40 = vshll.u32 %v4095_v28, 16 }
  0xed   : > { %4631 = vmatpush3.bf16.msra.mxu0 %v5014_v0  ;;  %v2798_v0 = vor.u32 %v2797_v27, %v2794_v53  ;;  %v2873_v51 = vshll.u32 %v4088_v42, 16  ;;  %v5705_v53 = vld [vmem:[#allocation6 + $0x228] sm:$0xff]   ;;  %v2877_v56 = vshrl.u32 %v4088_v42, 16  ;;  %v2885_v1 = vrot.slane %v2883_v57, 5  ;;  %v4125_v57 = vld [vmem:[%s5372_s9 + $0xf4] sm:$0xf] }
  0xee   : > { %4503 = vmatpush3.bf16.msra.mxu1 %v5013_v62  ;;  %4648 = vmatprep.subr.bf16.mxu0 %v5017_v26  ;;  %v5674_v62 = vld [vmem:[#allocation6 + $0x210] sm:$0xff]   ;;  %v2809_v11 = vrot.slane %v2808_v5, 4  ;;  %v2837_v16 = vrot.slane %v2835_v10, 5  ;;  %v4091_v5 = vld [vmem:[%s5372_s9 + $0x10c] sm:$0xf] }
  0xef   : > { %4680 = vmatprep.subr.bf16.mxu1 %v5017_v26  ;;  %v2799_v7 = vrot.slane %v2798_v0, 4  ;;  %v2879_v0 = vrot.slane %v2877_v56, 4  ;;  %v2897_v10 = vshll.u32 %v4091_v5, 16  ;;  %v4124_v56 = vld [vmem:[%s5372_s9 + $0xf0] sm:$0xe] }
  0xf0   : > { %4633 = vmatmul.mubr.bf16.vlgmr.msra.gmra.mrb[0].mxu0 %v4097_v4  ;;  %v2814_v19 = vsel %vm5391_vm2, %v2809_v11, %v2813_v60  ;;  %v2838_v43 = vsel %vm5391_vm2, %v2833_v32, %v2837_v16  ;;  %v2875_v60 = vrot.slane %v2873_v51, 5  ;;  %v4090_v4 = vld [vmem:[%s5372_s9 + $0x108] sm:$0xf]  ;;  %v2901_v11 = vshrl.u32 %v4091_v5, 16  ;;  %v4127_v54 = vld [vmem:[%s5372_s9 + $0xfc] sm:$0xe] }
  0xf1   : > { %4505 = vmatmul.mubr.bf16.vlgmr.msra.gmra.mrb[0].mxu1 %v5016_v14  ;;  %4649 = vmatpush3.bf16.msra.mxu0 %v5017_v26  ;;  %v2804_v14 = vsel %vm5391_vm2, %v2799_v7, %v2803_v58  ;;  %v2857_v58 = vrot.slane %v2856_v49, 4  ;;  %v2891_v8 = vshll.u32 %v4090_v4, 16  ;;  %v2899_v20 = vrot.slane %v2897_v10, 5  ;;  %v4114_v49 = vld [vmem:[%s5372_s9 + $0xc8] sm:$0x1] }
  0xf2   : > { %4688 = vmatpush3.bf16.msra.mxu1 %v5017_v26  ;;  %4508 = vmatprep.mubr.bf16.mxu1 %v5019_v35  ;;  %v4098_v26 = vcombine.low %v2804_v14, %v2814_v19  ;;  %v2845_v35 = vrot.slane %v2843_v24, 5  ;;  %v2880_v7 = vor.u32 %v2879_v0, %v2875_v60  ;;  %v5719_v14 = vld [vmem:[#allocation6 + $0x230] sm:$0xff]   ;;  %v2903_v21 = vrot.slane %v2901_v11, 4  ;;  %v5727_v24 = vld [vmem:[#allocation6 + $0x238] sm:$0xff]   ;;  %v4129_v18 = vld [vmem:[%s5372_s9 + $0x104] sm:$0x1] }
  0xf3   : > { %4681 = vmatprep.subr.bf16.mxu1 %v5658_v34  ;;  %4650 = vmatprep.subr.bf16.mxu0 %v5658_v34  ;;  %v2862_v2 = vsel %vm5391_vm2, %v2857_v58, %v2861_v47  ;;  %v4141_v36 = vrot.slane %v4127_v54, 9 }
  0xf4   : > { %4636 = vmatprep.mubr.bf16.mxu0 %v4098_v26  ;;  %v2846_v45 = vor.u32 %v2845_v35, %v2842_v33  ;;  %v2881_v15 = vrot.slane %v2880_v7, 4  ;;  %v2904_v32 = vor.u32 %v2903_v21, %v2899_v20  ;;  %v2921_v33 = vshll.u32 %v4094_v23, 16  ;;  %v4117_v7 = vld [vmem:[%s5372_s9 + $0xd4] sm:$0x1] }
  0xf5   : > { %4651 = vmatpush3.bf16.msra.mxu0 %v5658_v34  ;;  %v2925_v35 = vshrl.u32 %v4094_v23, 16  ;;  %v3237_v11 = vrot.slane %v4117_v7, 5 }
  0xf6   : > { %4689 = vmatpush3.bf16.msra.mxu1 %v5658_v34  ;;  %4652 = vmatprep.subr.bf16.mxu0 %v5674_v62  ;;  %v4099_v34 = vcombine.low %v2828_v38, %v2838_v43  ;;  %v2847_v27 = vrot.slane %v2846_v45, 4  ;;  %v2914_v38 = vrot.slane %v2912_v29, 4  ;;  %v2905_v41 = vrot.slane %v2904_v32, 4  ;;  %v4112_v45 = vld [vmem:[%s5372_s9 + $0xc0] sm:$0xe] }
  0xf7   : > { %4682 = vmatprep.subr.bf16.mxu1 %v5674_v62  ;;  %v2923_v42 = vrot.slane %v2921_v33, 5  ;;  %v2927_v43 = vrot.slane %v2925_v35, 4  ;;  %v4136_v50 = vrot.slane %v4112_v45, 9  ;;  %v4122_v45 = vld [vmem:[%s5372_s9 + $0xe8] sm:$0xf] }
  0xf8   : > { %4637 = vmatmul.mubr.bf16.gmra.mrb[4].mxu0 %v4099_v34  ;;  %v2852_v63 = vsel %vm5391_vm2, %v2847_v27, %v2851_v39  ;;  %v2917_v39 = vrot.slane %v2915_v30, 5  ;;  %v4113_v34 = vld [vmem:[%s5372_s9 + $0xc4] sm:$0xf]  ;;  %v2910_v51 = vsel %vm5391_vm2, %v2905_v41, %v2909_v22 }
  0xf9   : > { %4509 = vmatmul.mubr.bf16.gmra.mrb[4].mxu1 %v5020_v55  ;;  %v2866_v55 = vrot.slane %v2864_v44, 4  ;;  %4653 = vmatpush3.bf16.msra.mxu0 %v5674_v62  ;;  %v4100_v46 = vcombine.low %v2852_v63, %v2862_v2  ;;  %v2933_v44 = vrot.slane %v2931_v40, 5  ;;  %v3227_v27 = vrot.slane %v4113_v34, 5  ;;  %v4123_v34 = vld [vmem:[%s5372_s9 + $0xec] sm:$0x1] }
  0xfa   : > { %4690 = vmatpush3.bf16.msra.mxu1 %v5674_v62  ;;  %4512 = vmatprep.mubr.bf16.mxu1 %v5023_v17  ;;  %v2888_v62 = vshrl.u32 %v4090_v4, 16  ;;  %v2893_v17 = vrot.slane %v2891_v8, 5  ;;  %v2918_v48 = vor.u32 %v2917_v39, %v2914_v38  ;;  %v3255_v63 = vrot.slane %v4125_v57, 5  ;;  %v4115_v4 = vld [vmem:[%s5372_s9 + $0xcc] sm:$0xe] }
  0xfb   : > { %4683 = vmatprep.subr.bf16.mxu1 %v5681_v13  ;;  %4654 = vmatprep.subr.bf16.mxu0 %v5681_v13  ;;  %v2870_v3 = vor.u32 %v2869_v59, %v2866_v55  ;;  %v3230_v55 = vrot.slane %v4114_v49, 5  ;;  %v3229_v2 = vrot.slane %v3227_v27, 4  ;;  %v4132_v38 = vld [vmem:[%s5372_s9 + $0x110] sm:$0x1]  ;;  %v3248_v49 = vrot.slane %v4122_v45, 5 }
  0xfc   : > { %4640 = vmatprep.mubr.bf16.mxu0 %v4100_v46  ;;  %v2890_v16 = vrot.slane %v2888_v62, 4  ;;  %v2919_v59 = vrot.slane %v2918_v48, 4  ;;  %v3257_v6 = vrot.slane %v3255_v63, 4  ;;  %v4116_v46 = vld [vmem:[%s5372_s9 + $0xd0] sm:$0xf]  ;;  %v4137_v62 = vrot.slane %v4115_v4, 9 }
  0xfd   : > { %v2871_v9 = vrot.slane %v2870_v3, 4  ;;  %4655 = vmatpush3.bf16.msra.mxu0 %v5681_v13  ;;  %v3234_v10 = vrot.slane %v4116_v46, 5 }
  0xfe   : > { %4691 = vmatpush3.bf16.msra.mxu1 %v5681_v13  ;;  %4656 = vmatprep.subr.bf16.mxu0 %v5025_v52  ;;  %v2886_v13 = vsel %vm5391_vm2, %v2881_v15, %v2885_v1  ;;  %v2894_v26 = vor.u32 %v2893_v17, %v2890_v16  ;;  %v3228_v1 = vsel %vm5457_vm5, %v4136_v50, %v3227_v27  ;;  %v4133_v27 = vld [vmem:[%s5372_s9 + $0x114] sm:$0xe] }
  0xff   : > { %4684 = vmatprep.subr.bf16.mxu1 %v5025_v52  ;;  %v2876_v19 = vsel %vm5391_vm2, %v2871_v9, %v2875_v60  ;;  %v4126_v60 = vld [vmem:[%s5372_s9 + $0xf8] sm:$0x1]  ;;  %v3231_v9 = vsel %vm5457_vm5, %v3229_v2, %v3230_v55  ;;  %v3235_v21 = vsel %vm5457_vm5, %v4137_v62, %v3234_v10  ;;  %v3236_v22 = vrot.slane %v3234_v10, 4 }
 0x100   : > { %v2895_v37 = vrot.slane %v2894_v26, 4  ;;  %v3258_v3 = vrot.slane %v4126_v60, 5  ;;  %v4144_v16 = vcombine.low %v3228_v1, %v3231_v9  ;;  %v3265_v26 = vrot.slane %v4129_v18, 5  ;;  %v4134_v55 = vld [vmem:[%s5372_s9 + $0x118] sm:$0xf] }
 0x101   : > { %4513 = vmatmul.mubr.bf16.gmra.mrb[8].mxu1 %v5024_v31  ;;  %v4101_v31 = vcombine.low %v2876_v19, %v2886_v13  ;;  %4657 = vmatpush3.bf16.msra.mxu0 %v5025_v52  ;;  %v4118_v19 = vld [vmem:[%s5372_s9 + $0xd8] sm:$0xe]  ;;  %v4119_v13 = vld [vmem:[%s5372_s9 + $0xdc] sm:$0xf]  ;;  %v3238_v32 = vsel %vm5457_vm5, %v3236_v22, %v3237_v11 }
 0x102   : > { %4692 = vmatpush3.bf16.msra.mxu1 %v5025_v52  ;;  %4516 = vmatprep.mubr.bf16.mxu1 %v5027_v61  ;;  %v2900_v47 = vsel %vm5391_vm2, %v2895_v37, %v2899_v20  ;;  %v2928_v52 = vor.u32 %v2927_v43, %v2923_v42  ;;  %v4140_v61 = vrot.slane %v4124_v56, 9  ;;  %v3259_v17 = vsel %vm5457_vm5, %v3257_v6, %v3258_v3  ;;  %v4131_v37 = vld [vmem:[%s5372_s9 + $0x10c] sm:$0xf]  ;;  %v4121_v43 = vld [vmem:[%s5372_s9 + $0xe4] sm:$0xe] }
 0x103   : > { %4685 = vmatprep.subr.bf16.mxu1 %v5705_v53  ;;  %4641 = vmatmul.mubr.bf16.gmra.mrb[8].mxu0 %v4101_v31  ;;  %v4102_v58 = vcombine.low %v2900_v47, %v2910_v51  ;;  %v4138_v28 = vrot.slane %v4118_v19, 9  ;;  %v3241_v29 = vrot.slane %v4119_v13, 5  ;;  %v4130_v31 = vld [vmem:[%s5372_s9 + $0x108] sm:$0xe]  ;;  %v4145_v47 = vcombine.low %v3235_v21, %v3238_v32  ;;  %v4135_v60 = vld [vmem:[%s5372_s9 + $0x11c] sm:$0x1] }
 0x104   : > { %4658 = vmatprep.subr.bf16.mxu0 %v5705_v53  ;;  %v2929_v0 = vrot.slane %v2928_v52, 4  ;;  %v3256_v5 = vsel %vm5457_vm5, %v4140_v61, %v3255_v63  ;;  %v4142_v39 = vrot.slane %v4130_v31, 9  ;;  %v4139_v57 = vrot.slane %v4121_v43, 9 }
 0x105   : > { %4659 = vmatpush3.bf16.msra.mxu0 %v5705_v53  ;;  %4644 = vmatprep.mubr.bf16.mxu0 %v4102_v58  ;;  %v4148_v20 = vcombine.low %v3256_v5, %v3259_v17  ;;  %v3242_v40 = vsel %vm5457_vm5, %v4138_v28, %v3241_v29  ;;  %v3243_v41 = vrot.slane %v3241_v29, 4  ;;  %v3250_v58 = vrot.slane %v3248_v49, 4 }
 0x106   : > { %4693 = vmatpush3.bf16.msra.mxu1 %v5705_v53  ;;  %4660 = vmatprep.subr.bf16.mxu0 %v5719_v14  ;;  %v2924_v53 = vsel %vm5391_vm2, %v2919_v59, %v2923_v42  ;;  %v2934_v8 = vsel %vm5391_vm2, %v2929_v0, %v2933_v44  ;;  %v3269_v42 = vrot.slane %v4131_v37, 5  ;;  %v3272_v44 = vrot.slane %v4132_v38, 5 }
 0x107   : > { %4686 = vmatprep.subr.bf16.mxu1 %v5719_v14  ;;  %v4103_v15 = vcombine.low %v2924_v53, %v2934_v8  ;;  %v3251_v59 = vrot.slane %v4123_v34, 5  ;;  %v4143_v63 = vrot.slane %v4133_v27, 9  ;;  %v3276_v0 = vrot.slane %v4134_v55, 5 }
 0x108   : > { %v3270_v51 = vsel %vm5457_vm5, %v4142_v39, %v3269_v42  ;;  %v3271_v52 = vrot.slane %v3269_v42, 4  ;;  %v3279_v1 = vrot.slane %v4135_v60, 5  ;;  %v3249_v53 = vsel %vm5457_vm5, %v4139_v57, %v3248_v49 }
 0x109   : > { %4517 = vmatmul.mubr.bf16.gmra.mrb[12].mxu1 %v5028_v12  ;;  %v4128_v12 = vld [vmem:[%s5372_s9 + $0x100] sm:$0xf]  ;;  %4661 = vmatpush3.bf16.msra.mxu0 %v5719_v14  ;;  %v3277_v3 = vsel %vm5457_vm5, %v4143_v63, %v3276_v0  ;;  %v3278_v4 = vrot.slane %v3276_v0, 4  ;;  %v3252_v5 = vsel %vm5457_vm5, %v3250_v58, %v3251_v59 }
 0x10a   : > { %4694 = vmatpush3.bf16.msra.mxu1 %v5719_v14  ;;  %4662 = vmatprep.subr.bf16.mxu0 %v5727_v24  ;;  %v3262_v23 = vrot.slane %v4128_v12, 5  ;;  %v4120_v14 = vld [vmem:[%s5372_s9 + $0xe0] sm:$0x1]  ;;  %v3273_v61 = vsel %vm5457_vm5, %v3271_v52, %v3272_v44  ;;  %v4147_v7 = vcombine.low %v3249_v53, %v3252_v5 }
 0x10b   : > { %4687 = vmatprep.subr.bf16.mxu1 %v5727_v24  ;;  %4645 = vmatmul.mubr.bf16.gmra.mrb[12].mxu0 %v4103_v15  ;;  %v3244_v30 = vrot.slane %v4120_v14, 5  ;;  %v4150_v2 = vcombine.low %v3270_v51, %v3273_v61  ;;  %v3280_v6 = vsel %vm5457_vm5, %v3278_v4, %v3279_v1 }
 0x10c   : > { %4664 = vmatprep.mubr.bf16.mxu0 %v4144_v16  ;;  %4672 = vmatprep.mubr.bf16.mxu1 %v4148_v20  ;;  %v3263_v33 = vsel %vm5457_vm5, %v4141_v36, %v3262_v23  ;;  %v3264_v35 = vrot.slane %v3262_v23, 4  ;;  %v4151_v46 = vcombine.low %v3277_v3, %v3280_v6 }
 0x10d   : > { %4663 = vmatpush3.bf16.msra.mxu0 %v5727_v24 }
 0x10e   : > { %4695 = vmatpush3.bf16.msra.mxu1 %v5727_v24  ;;  %v3266_v48 = vsel %vm5457_vm5, %v3264_v35, %v3265_v26  ;;  %v3245_v24 = vsel %vm5457_vm5, %v3243_v41, %v3244_v30 }
 0x10f   : > { %v4149_v50 = vcombine.low %v3263_v33, %v3266_v48  ;;  %v4146_v56 = vcombine.low %v3242_v40, %v3245_v24 }
 0x111   : > { %4673 = vmatmul.mubr.bf16.vlgmr.msra.gmra.mrb[16].mxu1 %v4149_v50 }
 0x112   : > { %4676 = vmatprep.mubr.bf16.mxu1 %v4150_v2 }
 0x113   : > { %4665 = vmatmul.mubr.bf16.vlgmr.msra.gmra.mrb[0].mxu0 %v4145_v47 }
 0x114   : > { %4668 = vmatprep.mubr.bf16.mxu0 %v4146_v56 }
 0x119   : > { %4677 = vmatmul.mubr.bf16.gmra.mrb[20].mxu1 %v4151_v46 }
 0x11b   : > { %4669 = vmatmul.mubr.bf16.gmra.mrb[4].mxu0 %v4147_v7 }
 0x1c4   : > { %v4506_v62 = vpop.f32.mrb[0].mxu1 }
 0x1c5   : > { %v1545_v8 = vpop.f32.mrb[1].mxu1 }
 0x1c6   : > { %v4507_v9 = vpop.f32.mrb[2].mxu1 }
 0x1c7   : > { %v1548_v10 = vpop.f32.mrb[3].mxu1 }
 0x1cc   : > { %v5806_v11 = vpop.f32.mrb[4].mxu1 }
 0x1cd   : > { %v5808_v54 = vpop.f32.mrb[5].mxu1 }
 0x1ce   : > { %v5810_v12 = vpop.f32.mrb[6].mxu1 }
 0x1cf   : > { %v5812_v15 = vpop.f32.mrb[7].mxu1 }
 0x1d4   : > { %v4514_v16 = vpop.f32.mrb[8].mxu1 }
 0x1d5   : > { %v1577_v17 = vpop.f32.mrb[9].mxu1 }
 0x1d6   : > { %v4515_v25 = vpop.f32.mrb[10].mxu1  ;;  %v4642_v20 = vpop.f32.mrb[8].mxu0 }
 0x1d7   : > { %v1580_v18 = vpop.f32.mrb[11].mxu1  ;;  %v4704_v22 = vadd.f32 %v4642_v20, %v4514_v16  ;;  %v3114_v23 = vpop.f32.mrb[9].mxu0 }
 0x1d8   : > { %v4706_v14 = vadd.f32 %v3114_v23, %v1577_v17  ;;  %v4643_v26 = vpop.f32.mrb[10].mxu0 }
 0x1d9   : > { %v4708_v28 = vadd.f32 %v4643_v26, %v4515_v25  ;;  %v3117_v29 = vpop.f32.mrb[11].mxu0 }
 0x1da   : > { %v4710_v30 = vadd.f32 %v3117_v29, %v1580_v18 }
 0x1dc   : > { %v4518_v36 = vpop.f32.mrb[12].mxu1 }
 0x1dd   : > { %v1593_v19 = vpop.f32.mrb[13].mxu1 }
 0x1de   : > { %v4519_v21 = vpop.f32.mrb[14].mxu1  ;;  %v4646_v31 = vpop.f32.mrb[12].mxu0 }
 0x1df   : > { %v1596_v13 = vpop.f32.mrb[15].mxu1  ;;  %v4712_v32 = vadd.f32 %v4646_v31, %v4518_v36  ;;  %v3130_v33 = vpop.f32.mrb[13].mxu0 }
 0x1e0   : > { %v4714_v35 = vadd.f32 %v3130_v33, %v1593_v19  ;;  %v4647_v37 = vpop.f32.mrb[14].mxu0 }
 0x1e1   : > { %v4716_v38 = vadd.f32 %v4647_v37, %v4519_v21  ;;  %v3133_v39 = vpop.f32.mrb[15].mxu0 }
 0x1e2   : > { %v4718_v40 = vadd.f32 %v3133_v39, %v1596_v13 }
 0x1e4   : > { %v4674_v41 = vpop.f32.mrb[16].mxu1 }
 0x1e5   : > { %v5814_v42 = vadd.f32 %v4704_v22, %v4674_v41  ;;  %v3460_v43 = vpop.f32.mrb[17].mxu1 }
 0x1e6   : > { %v4666_v45 = vpop.f32.mrb[0].mxu0  ;;  %v5817_v47 = vadd.f32 %v4706_v14, %v3460_v43  ;;  %v4675_v48 = vpop.f32.mrb[18].mxu1 }
 0x1e7   : > { %v4696_v44 = vadd.f32 %v4666_v45, %v4506_v62  ;;  %v3428_v34 = vpop.f32.mrb[1].mxu0  ;;  %v5819_v49 = vadd.f32 %v4708_v28, %v4675_v48  ;;  %v3463_v50 = vpop.f32.mrb[19].mxu1 }
 0x1e8   : > { %v4697_v24 = vadd.f32 %v3428_v34, %v1545_v8  ;;  %v4667_v51 = vpop.f32.mrb[2].mxu0  ;;  %v5821_v52 = vadd.f32 %v4710_v30, %v3463_v50 }
 0x1e9   : > { %v4698_v27 = vadd.f32 %v4667_v51, %v4507_v9  ;;  %v4229_v55 = vpack.c.bf16 %v5819_v49, %v5814_v42  ;;  %v3431_v56 = vpop.f32.mrb[3].mxu0  ;;  %v3642_v4 = vmul.f32 %v4696_v44, %v4696_v44 }
 0x1ea   : > { %v4699_v57 = vadd.f32 %v3431_v56, %v1548_v10  ;;  %v4224_v58 = vpack.c.bf16 %v5821_v52, %v5817_v47  ;;  %v3640_v60 = vmul.f32 %v4697_v24, %v4697_v24 }
 0x1eb   : > { %v4209_v59 = vpack.c.bf16 %v4698_v27, %v4696_v44  ;;  %4245 = vst [vmem:[%s5827_s26 + $0x28] sm:$0xff] %v4229_v55   ;;  %v3643_v16 = vmul.f32 %v4698_v27, %v4698_v27 }
 0x1ec   : > { %v4204_v61 = vpack.c.bf16 %v4699_v57, %v4697_v24  ;;  %v3619_v63 = vadd.f32 %v4699_v57, %v4697_v24  ;;  %v3641_v0 = vmul.f32 %v4699_v57, %v4699_v57  ;;  %4244 = vst [vmem:[%s5827_s26 + $0x20] sm:$0xff] %v4224_v58   ;;  %v4678_v1 = vpop.f32.mrb[20].mxu1 }
 0x1ed   : > { %4241 = vst [vmem:[%s5827_s26 + $0x8] sm:$0xff] %v4209_v59   ;;  %v5834_v2 = vadd.f32 %v4712_v32, %v4678_v1  ;;  %v3476_v3 = vpop.f32.mrb[21].mxu1 }
 0x1ee   : > { %4205 = vst [vmem:[%s5827_s26] sm:$0xff] %v4204_v61   ;;  %v3620_v53 = vadd.f32 %v4696_v44, %v3619_v63  ;;  %v3656_v5 = vadd.f32 %v3641_v0, %v3640_v60  ;;  %v4670_v6 = vpop.f32.mrb[4].mxu0  ;;  %v5837_v46 = vadd.f32 %v4714_v35, %v3476_v3  ;;  %v4679_v7 = vpop.f32.mrb[22].mxu1 }
 0x1ef   : > { %v4700_v62 = vadd.f32 %v4670_v6, %v5806_v11  ;;  %v3444_v8 = vpop.f32.mrb[5].mxu0  ;;  %v5840_v9 = vadd.f32 %v4716_v38, %v4679_v7  ;;  %v3479_v10 = vpop.f32.mrb[23].mxu1 }
 0x1f0   : > { %v3657_v17 = vadd.f32 %v3656_v5, %v3642_v4  ;;  %v4701_v25 = vadd.f32 %v3444_v8, %v5808_v54  ;;  %v3621_v18 = vadd.f32 %v4698_v27, %v3620_v53  ;;  %v4671_v36 = vpop.f32.mrb[6].mxu0  ;;  %v4719_v54 = vadd.f32 %v4718_v40, %v3479_v10 }
 0x1f1   : > { %v4702_v19 = vadd.f32 %v4671_v36, %v5810_v12  ;;  %v4239_v20 = vpack.c.bf16 %v5840_v9, %v5834_v2  ;;  %v3447_v21 = vpop.f32.mrb[7].mxu0 }
 0x1f2   : > { %v3622_v11 = vadd.f32 %v4701_v25, %v3621_v18  ;;  %v3644_v22 = vmul.f32 %v4701_v25, %v4701_v25  ;;  %v3658_v23 = vadd.f32 %v3657_v17, %v3643_v16  ;;  %v4703_v13 = vadd.f32 %v3447_v21, %v5812_v15 }
 0x1f3   : > { %v4219_v14 = vpack.c.bf16 %v4702_v19, %v4700_v62  ;;  %4247 = vst [vmem:[%s5827_s26 + $0x38] sm:$0xff] %v4239_v20   ;;  %v4234_v30 = vpack.c.bf16 %v4719_v54, %v5837_v46  ;;  %v3646_v15 = vmul.f32 %v4700_v62, %v4700_v62  ;;  %v3647_v33 = vmul.f32 %v4702_v19, %v4702_v19 }
 0x1f4   : > { %v3659_v26 = vadd.f32 %v3658_v23, %v3644_v22  ;;  %v4214_v12 = vpack.c.bf16 %v4703_v13, %v4701_v25  ;;  %v3623_v28 = vadd.f32 %v4703_v13, %v3622_v11  ;;  %v3645_v29 = vmul.f32 %v4703_v13, %v4703_v13 }
 0x1f5   : > { %4243 = vst [vmem:[%s5827_s26 + $0x18] sm:$0xff] %v4219_v14   ;;  %4246 = vst [vmem:[%s5827_s26 + $0x30] sm:$0xff] %v4234_v30  }
 0x1f6   : > { %4242 = vst [vmem:[%s5827_s26 + $0x10] sm:$0xff] %v4214_v12   ;;  %v3624_v31 = vadd.f32 %v4700_v62, %v3623_v28  ;;  %v3660_v32 = vadd.f32 %v3659_v26, %v3645_v29 }
 0x1f8   : > { %v3625_v35 = vadd.f32 %v4702_v19, %v3624_v31  ;;  %v3661_v37 = vadd.f32 %v3660_v32, %v3646_v15 }
 0x1f9   : > { %5072 = shalt.err (!%p5069_p0)
}
 0x1fa   : > { %s5073_s10 = scalar_lea.hbm %s5856_s25, 1024  ;;  %s5077_s9 = scalar_lea.hbm %s5967_s2, 4096 }
 0x1fb   : > { %p5074_p1 = scmp.ne.s32.totalorder %s5856_s25, %s5073_s10  ;;  %p5078_p6 = scmp.lt.u32.totalorder %s5856_s25, %s5967_s2 }
 0x1fc   : > { %p5079_p8 = scmp.lt.u32.totalorder %s5077_s9, %s5073_s10  ;;  %p5081_p13 = scmp.lt.u32.totalorder %s5073_s10, %s5856_s25 }
 0x1fd   : > { %p5075_p5 = pnand %p5074_p1, %p6001_p2 }
 0x1fe   : > { %p5080_p9 = por %p5079_p8, %p5078_p6 }
 0x1ff   : > { %p5076_p3 = pneg %p5075_p5 }
 0x200   : > { %p5082_p4 = por %p5081_p13, %p5080_p9 }
 0x202   : > { %p5083_p7 = pnand %p5082_p4, %p5076_p3 }
 0x204   : > { %5086 = shalt.err (!%p5083_p7)
}
 0x205   : > { %s5205_s27 = smov 64   ;;  %s5206_s28 = smov 4   ;;  %v3648_v38 = vmul.f32 %v5817_v47, %v5817_v47  ;;  %v3626_v39 = vadd.f32 %v5817_v47, %v3625_v35  ;;  %v3662_v40 = vadd.f32 %v3661_v37, %v3647_v33  ;;  %v3649_v41 = vmul.f32 %v5821_v52, %v5821_v52 }
 0x206   : > { %4841 = dma.vmem_to_hbm [thread:$0]  (%p6001_p2), %s5849_s21, 1024, %s5856_s25, %s3681_s30, %s5205_s27, %s5205_s27, %s5206_s28   ;;  %v3650_v48 = vmul.f32 %v5814_v42, %v5814_v42  ;;  %v3651_v50 = vmul.f32 %v5819_v49, %v5819_v49  ;;  %v3652_v47 = vmul.f32 %v5837_v46, %v5837_v46  ;;  %v3653_v56 = vmul.f32 %v4719_v54, %v4719_v54 }
 0x207   : > { %v3663_v43 = vadd.f32 %v3662_v40, %v3648_v38  ;;  %v3627_v45 = vadd.f32 %v5821_v52, %v3626_v39  ;;  %s3863_s7 = sshll.u32 %s5368_s17, 1  ;;  %s4181_s21 = sshll.u32 %s5181_s16, 1  ;;  %vm3677_vm6 = vcmask 1040384  }
 0x208   : > { %s3715_s11 = sadd.s32 %s5177_s15, %s4181_s21  ;;  %s261_s24 = scalar_lea.vmem [#allocation9], %s3863_s7 }
 0x209   : > { %v3628_v44 = vadd.f32 %v5814_v42, %v3627_v45  ;;  %v3664_v34 = vadd.f32 %v3663_v43, %v3649_v41  ;;  %v3654_v42 = vmul.f32 %v5834_v2, %v5834_v2  ;;  %s4182_s20 = sshll.u32 %s3715_s11, 5  ;;  %s3719_s25 = sshll.u32 %s261_s24, 4  ;;  %s5913_s25 = int_to_ptr.vmem [resolvable:$true] %s3719_s25 }
 0x20a   : > { %s5911_s4 = scalar_lea.hbm %s5968_s3, %s4182_s20  ;;  %s3686_s15 = scalar_lea.sflag [#allocation10], %s5368_s17 }
 0x20b   : > { %v3629_v24 = vadd.f32 %v5819_v49, %v3628_v44  ;;  %v3665_v51 = vadd.f32 %v3664_v34, %v3650_v48  ;;  %v3655_v49 = vmul.f32 %v5840_v9, %v5840_v9  ;;  %s5087_s16 = scalar_lea.vmem %s5913_s25, 32  ;;  %s5207_s1 = smov [#allocation9]  }
 0x20c   : > { %p5088_p10 = scmp.ne.s32.totalorder %s5913_s25, %s5087_s16  ;;  %s5091_s8 = sshll.u32 %s5207_s1, 4  ;;  %s5092_s8 = int_to_ptr.vmem [resolvable:$false] %s5091_s8 }
 0x20d   : > { %v3630_v27 = vadd.f32 %v5837_v46, %v3629_v24  ;;  %v3666_v55 = vadd.f32 %v3665_v51, %v3651_v50  ;;  %s5093_s10 = scalar_lea.vmem %s5092_s8, 64  ;;  %p5094_p0 = scmp.lt.s32.totalorder %s5913_s25, %s5092_s8 }
 0x20e   : > { %p5089_p11 = pnand %p5088_p10, %p6001_p2  ;;  %p5095_p1 = scmp.lt.s32.totalorder %s5093_s10, %s5087_s16 }
 0x20f   : > { %v3631_v52 = vadd.f32 %v4719_v54, %v3630_v27  ;;  %v3667_v57 = vadd.f32 %v3666_v55, %v3652_v47 }
 0x210   : > { %p5090_p12 = pneg %p5089_p11  ;;  %p5096_p5 = por %p5095_p1, %p5094_p0 }
 0x211   : > { %v3632_v58 = vadd.f32 %v5834_v2, %v3631_v52  ;;  %v3668_v59 = vadd.f32 %v3667_v57, %v3653_v56 }
 0x212   : > { %p5097_p3 = pnand %p5096_p5, %p5090_p12 }
 0x213   : > { %v3633_v60 = vadd.f32 %v5840_v9, %v3632_v58  ;;  %v3669_v61 = vadd.f32 %v3668_v59, %v3654_v42 }
 0x215   : > { %v3634_v63 = vrot.slane %v3633_v60, 4  ;;  %v3670_v0 = vadd.f32 %v3669_v61, %v3655_v49 }
 0x217   : > { %v3635_v1 = vadd.f32 %v3634_v63, %v3633_v60  ;;  %v3671_v3 = vrot.slane %v3670_v0, 4 }
 0x219   : > { %v3636_v4 = vrot.slane %v3635_v1, 2  ;;  %v3672_v53 = vadd.f32 %v3671_v3, %v3670_v0 }
 0x21b   : > { %v3637_v5 = vadd.f32 %v3636_v4, %v3635_v1  ;;  %v3673_v6 = vrot.slane %v3672_v53, 2 }
 0x21d   : > { %v3638_v2 = vrot.slane %v3637_v5, 1  ;;  %v3674_v46 = vadd.f32 %v3673_v6, %v3672_v53 }
 0x21f   : > { %v3675_v7 = vrot.slane %v3674_v46, 1  ;;  %v3639_v62 = vadd.f32 %v3638_v2, %v3637_v5 }
 0x221   : > { %v3676_v8 = vadd.f32 %v3675_v7, %v3674_v46 }
 0x223   : > { %v3678_v9 = vsel %vm3677_vm6, %v3639_v62, %v3676_v8 }
 0x224   : > { %3679 = vst [vmem:[%s261_s24] sm:$0x3] %v3678_v9 }
 0x225   : > { %5100 = shalt.err (!%p5097_p3)
}
 0x226   : > { %s5101_s17 = scalar_lea.hbm %s5911_s4, 32  ;;  %s5105_s9 = scalar_lea.hbm %s5968_s3, 128 }
 0x227   : > { %p5102_p6 = scmp.ne.s32.totalorder %s5911_s4, %s5101_s17  ;;  %p5106_p13 = scmp.lt.u32.totalorder %s5911_s4, %s5968_s3 }
 0x228   : > { %p5107_p4 = scmp.lt.u32.totalorder %s5105_s9, %s5101_s17  ;;  %p5109_p10 = scmp.lt.u32.totalorder %s5101_s17, %s5911_s4 }
 0x229   : > { %p5103_p8 = pnand %p5102_p6, %p6001_p2 }
 0x22a   : > { %p5108_p7 = por %p5107_p4, %p5106_p13 }
 0x22b   : > { %p5104_p9 = pneg %p5103_p8 }
 0x22c   : > { %p5110_p11 = por %p5109_p10, %p5108_p7 }
 0x22e   : > { %p5111_p12 = pnand %p5110_p11, %p5104_p9 }
 0x230   : > { %5114 = shalt.err (!%p5111_p12)
}
 0x231   : > { %4842 = dma.vmem_to_hbm [thread:$0]  (%p6001_p2), %s5913_s25, 32, %s5911_s4, %s3686_s15  }
 0x232 PF: > { %p4859_p0 = scmp.ge.s32.totalorder %s5193_s19, 2  ;;  %s3731_s27 = sand.u32 1, %s5165_s12  }
 0x233   : > { %p6002_p1 = scmp.ne.s32.totalorder %s5988_s5, 0  ;;  %s3732_s28 = scalar_lea.sflag [#allocation5], %s3731_s27 }
 0x235   : > { %p4850_p5 = pnand %p4859_p0, %p6002_p1 }
 0x237   : > { %5156 = dma.done.wait (!%p4850_p5), %s3732_s28, 1024  }
 0x238   : > { %5158 = vsyncadd (!%p4850_p5), %s3732_s28, 4294966272  ;;  %s3741_s7 = scalar_lea.sflag [#allocation10], %s3731_s27 }
 0x239   : > { %5160 = dma.done.wait (!%p4850_p5), %s3741_s7, 32  }
 0x23a   : > { %5162 = vsyncadd (!%p4850_p5), %s3741_s7, 4294967264  ;;  %s24_s19 = sadd.s32 1, %s5193_s19   ;;  %s6003_s29 = sld [smem:[#allocation22_spill]] }
 0x23b   : > { %p21_p3 = scmp.ge.s32.totalorder %s24_s19, 6   ;;  %s6004_s15 = sld [smem:[#allocation18_spill]] }
 0x23c   : > { %s6005_s16 = sld [smem:[#allocation19_spill]]  ;;  %s6006_s17 = sld [smem:[#allocation20_spill]] }
 0x23d   : > { %s6007_s18 = sld [smem:[#allocation21_spill]]  ;;  %s6008_s12 = smov %s5169_s13 }
 0x23e   : > { %s6009_s13 = smov %s5173_s14  ;;  %23 = sbr.rel (!%p21_p3) target bundleno = 12 (0xc), region = 109 }
 0x240   : > { %s6010_s14 = smov %s6003_s29 }
 0x245   :  { %3746 = vsyncpa [#allocation4], 1 }
 0x246   :  { %3748 = vsyncpa [#allocation4 + $0x1], 1 }
 0x247   :  { %3749 = vsyncpa [#allocation7], 1 }
 0x248   :  { %3750 = vsyncpa [#allocation5], 1 }
 0x249   :  { %3752 = vsyncpa [#allocation5 + $0x1], 1 }
 0x24a   :  { %3753 = vsyncpa [#allocation10], 1 }
 0x24b   :  { %3755 = vsyncpa [#allocation10 + $0x1], 1 }

</bundles_post_ra>
